<compile_context>
chip_gen: v7x
topology: tpu7x:2x2x1
jax: 0.10.0
libtpu: 0.0.40
codegen_flags: <defaults>
</compile_context>

<pallas_src>
import functools

import jax
import jax.numpy as jnp
from jax.experimental import pallas as pl
from jax.experimental.pallas import tpu as pltpu

LANE = 128           # fc1 / (padded) fc2 / (padded) fc3 output width inside the kernel
NEG_INF = -1.0e30    # padded-class bias: exp(NEG_INF - m) underflows to exactly 0


# --------------------------------------------------------------------------------------
# Kernel: fc1 -> ReLU -> fc2 -> ReLU -> fc3 -> softmax, one batch tile per grid step.
# --------------------------------------------------------------------------------------
def mlp_kernel(x_ref, w1_ref, b1_ref, w2_ref, b2_ref, w3_ref, b3_ref, out_ref,
               *, num_classes):
    cdt = w1_ref.dtype                                   # bf16 MXU operands, f32 accum

    x = x_ref[...].astype(cdt)                                              # [bm, D]
    h1 = jnp.dot(x, w1_ref[...], preferred_element_type=jnp.float32) + b1_ref[...]
    h1 = jnp.maximum(h1, 0.0)                                               # [bm, 128] f32
    h2 = jnp.dot(h1.astype(cdt), w2_ref[...],
                 preferred_element_type=jnp.float32) + b2_ref[...]
    h2 = jnp.maximum(h2, 0.0)                                               # [bm, 128] f32
    logits = jnp.dot(h2.astype(cdt), w3_ref[...],
                     preferred_element_type=jnp.float32) + b3_ref[...]      # [bm, 128] f32

    # Padded class columns carry zero weights and a -1e30 bias, so they contribute
    # exactly 0 to the softmax -- no in-kernel masking needed.
    m = jnp.max(logits, axis=1, keepdims=True)
    e = jnp.exp(logits - m)
    inv = pl.reciprocal(jnp.sum(e, axis=1, keepdims=True), approx=True)     # EUP slot
    probs = e * inv                                                          # [bm, 128]
    out_ref[...] = probs[:, :num_classes].astype(out_ref.dtype)             # [bm, C]


# --------------------------------------------------------------------------------------
# Device-aware batch tiling.
# --------------------------------------------------------------------------------------
def _device_info():
    try:
        kind = jax.devices()[0].device_kind.lower()
    except Exception:
        kind = ""
    is_v5e = ("v5 lite" in kind) or ("v5e" in kind) or ("v5litepod" in kind)
    num_tc = 2 if "v7" in kind else 1          # v7x: 2 TensorCores per chip
    cap = 512 if is_v5e else 1024              # max batch-tile rows
    return num_tc, cap


def _pick_bm(batch, *, num_tc, cap):
    """Single-TC (v5e/v6e): one big tile -- the grid is a serial loop, so fewer steps win.
    Dual-TC (v7x): an even >=4-step grid so both TensorCores get balanced work."""
    if num_tc >= 2:
        for steps in (4, 6, 8, 2):
            if batch % steps == 0:
                bm = batch // steps
                if bm % 8 == 0 and bm <= cap:
                    return bm
    top = (min(cap, batch) // 8) * 8
    for bm in range(top, 0, -8):               # largest multiple-of-8 divisor <= cap
        if batch % bm == 0:
            return bm
    return batch                               # tiny batch: single full-extent block


# --------------------------------------------------------------------------------------
# One-time parameter preparation (padding + dtype cast), hoisted out of the hot path.
# --------------------------------------------------------------------------------------
def prepare_params(params, compute_dtype=jnp.bfloat16):
    """Pad fc2/fc3 to 128 lanes, encode the softmax class mask as -1e30 in the padded
    fc3 bias columns, and cast the matmul operands to the MXU compute dtype."""
    w1, b1 = params["w1"], params["b1"]        # [D,128],  [1,128]
    w2, b2 = params["w2"], params["b2"]        # [128,64], [1,64]
    w3, b3 = params["w3"], params["b3"]        # [64,C],   [1,C]
    C = w3.shape[1]

    w2p = jnp.zeros((w2.shape[0], LANE), jnp.float32).at[:, :w2.shape[1]].set(w2)
    b2p = jnp.zeros((1, LANE), jnp.float32).at[:, :b2.shape[1]].set(b2)
    w3p = jnp.zeros((LANE, LANE), jnp.float32).at[:w3.shape[0], :C].set(w3)
    b3p = jnp.full((1, LANE), NEG_INF, jnp.float32).at[:, :C].set(b3)

    return {
        "w1": w1.astype(compute_dtype), "b1": b1.astype(jnp.float32),
        "w2": w2p.astype(compute_dtype), "b2": b2p,
        "w3": w3p.astype(compute_dtype), "b3": b3p,
        "num_classes": C,
    }


# --------------------------------------------------------------------------------------
# Forward wrapper.
# --------------------------------------------------------------------------------------
def simple_nn_forward(x, prep, *, bm=None):
    """x: [B, input_dim] float32. prep: output of prepare_params(). Returns [B, C] f32."""
    B, D = x.shape
    C = prep["num_classes"]
    w1, b1 = prep["w1"], prep["b1"]
    w2, b2 = prep["w2"], prep["b2"]
    w3, b3 = prep["w3"], prep["b3"]

    num_tc, cap = _device_info()
    if bm is None:
        bm = _pick_bm(B, num_tc=num_tc, cap=cap)
    assert B % bm == 0, (B, bm)

    def resident(a):
        # Weights/biases never change across the grid: constant index, single buffer.
        try:
            return pl.BlockSpec(a.shape, lambda i: (0, 0), pipeline_mode=pl.Buffered(1))
        except TypeError:   # older jax without pipeline_mode on BlockSpec
            return pl.BlockSpec(a.shape, lambda i: (0, 0))

    itemsz = lambda a: a.size * a.dtype.itemsize
    cost = pl.CostEstimate(
        flops=2 * B * (D * LANE + LANE * LANE + LANE * LANE),
        transcendentals=B * LANE,                     # exp in the softmax
        bytes_accessed=itemsz(x) + B * C * 4
        + itemsz(w1) + itemsz(w2) + itemsz(w3)
        + itemsz(b1) + itemsz(b2) + itemsz(b3),
    )

    return pl.pallas_call(
        functools.partial(mlp_kernel, num_classes=C),
        out_shape=jax.ShapeDtypeStruct((B, C), jnp.float32),
        grid_spec=pltpu.PrefetchScalarGridSpec(
            num_scalar_prefetch=0,
            grid=(B // bm,),
            in_specs=[
                pl.BlockSpec((bm, D), lambda i: (i, 0)),   # x tile over batch (f32 in HBM)
                resident(w1), resident(b1),
                resident(w2), resident(b2),
                resident(w3), resident(b3),
            ],
            out_specs=pl.BlockSpec((bm, C), lambda i: (i, 0)),
        ),
        compiler_params=pltpu.CompilerParams(dimension_semantics=("parallel",)),
        cost_estimate=cost,
    )(x, w1, b1, w2, b2, w3, b3)


# --------------------------------------------------------------------------------------
# Parameter init (mimics nn.Linear's U(-1/sqrt(fan_in), 1/sqrt(fan_in))) and f32 reference.
# --------------------------------------------------------------------------------------
def init_params(key, input_dim, num_classes):
    ks = jax.random.split(key, 6)

    def linear(kw, kb, fan_in, fan_out):
        bound = 1.0 / jnp.sqrt(fan_in)
        w = jax.random.uniform(kw, (fan_in, fan_out), jnp.float32, -bound, bound)
        b = jax.random.uniform(kb, (1, fan_out), jnp.float32, -bound, bound)
        return w, b

    w1, b1 = linear(ks[0], ks[1], input_dim, 128)
    w2, b2 = linear(ks[2], ks[3], 128, 64)
    w3, b3 = linear(ks[4], ks[5], 64, num_classes)
    return {"w1": w1, "b1": b1, "w2": w2, "b2": b2, "w3": w3, "b3": b3}


def reference_forward(x, p):
    h1 = jnp.maximum(x @ p["w1"] + p["b1"], 0.0)
    h2 = jnp.maximum(h1 @ p["w2"] + p["b2"], 0.0)
    logits = h2 @ p["w3"] + p["b3"]
    return jax.nn.softmax(logits, axis=1)


if __name__ == "__main__":
    key = jax.random.PRNGKey(0)
    k_param, k_x = jax.random.split(key)

    # Small but MXU-meaningful shapes: B=512 -> single bm=512 tile on v5e/v6e,
    # 4 x bm=128 parallel steps on v7x.
    B, input_dim, num_classes = 512, 32, 10
    params = init_params(k_param, input_dim, num_classes)
    prep = prepare_params(params)                       # one-time pad + bf16 cast
    x = jax.random.normal(k_x, (B, input_dim), jnp.float32)

    out = jax.block_until_ready(simple_nn_forward(x, prep))
    ref = reference_forward(x, params)

    assert out.shape == (B, num_classes)
    # bf16 matmul operands + approx reciprocal -> modest tolerance vs full-f32 reference.
    assert jnp.allclose(out, ref, atol=1e-2, rtol=5e-2)
    assert jnp.allclose(jnp.sum(out, axis=1), jnp.ones((B,)), atol=5e-3)

    print("KERNEL_OK")
</pallas_src>

<mosaic_0001>
module attributes {stable_mosaic.version = 11 : i64} {
  func.func @mlp_kernel(%arg0: i32, %arg1: memref<512x32xf32, #tpu.memory_space<vmem>>, %arg2: memref<32x128xbf16, #tpu.memory_space<vmem>>, %arg3: memref<1x128xf32, #tpu.memory_space<vmem>>, %arg4: memref<128x128xbf16, #tpu.memory_space<vmem>>, %arg5: memref<1x128xf32, #tpu.memory_space<vmem>>, %arg6: memref<128x128xbf16, #tpu.memory_space<vmem>>, %arg7: memref<1x128xf32, #tpu.memory_space<vmem>>, %arg8: memref<512x10xf32, #tpu.memory_space<vmem>>) attributes {dimension_semantics = [#tpu.dimension_semantics<parallel>], iteration_bounds = array<i64: 1>, scalar_prefetch = 0 : i64, scratch_operands = 0 : i64, tpu.core_type = #tpu.core_type<tc>, window_params = [{transform_indices = @transform_0, window_bounds = array<i64: 512, 32>}, {pipeline_mode = #tpu.pipeline_mode<synchronous>, transform_indices = @transform_1, window_bounds = array<i64: 32, 128>}, {pipeline_mode = #tpu.pipeline_mode<synchronous>, transform_indices = @transform_2, window_bounds = array<i64: 1, 128>}, {pipeline_mode = #tpu.pipeline_mode<synchronous>, transform_indices = @transform_3, window_bounds = array<i64: 128, 128>}, {pipeline_mode = #tpu.pipeline_mode<synchronous>, transform_indices = @transform_4, window_bounds = array<i64: 1, 128>}, {pipeline_mode = #tpu.pipeline_mode<synchronous>, transform_indices = @transform_5, window_bounds = array<i64: 128, 128>}, {pipeline_mode = #tpu.pipeline_mode<synchronous>, transform_indices = @transform_6, window_bounds = array<i64: 1, 128>}, {transform_indices = @transform_7, window_bounds = array<i64: 512, 10>}]} {
    %c0 = arith.constant 0 : index
    %c0_0 = arith.constant 0 : index
    %0 = vector.load %arg1[%c0, %c0_0] : memref<512x32xf32, #tpu.memory_space<vmem>>, vector<512x32xf32>
    %1 = arith.truncf %0 : vector<512x32xf32> to vector<512x32xbf16>
    %c0_1 = arith.constant 0 : index
    %c0_2 = arith.constant 0 : index
    %2 = vector.load %arg2[%c0_1, %c0_2] : memref<32x128xbf16, #tpu.memory_space<vmem>>, vector<32x128xbf16>
    %cst = arith.constant dense<0.000000e+00> : vector<512x128xf32>
    %3 = tpu.matmul %1, %2, %cst {dimension_numbers = #tpu.dot_dimension_numbers<[1], [0], [0], [1], [0, 0, 1, 1], [], []>} : vector<512x32xbf16>, vector<32x128xbf16>, vector<512x128xf32> -> vector<512x128xf32>
    %c0_3 = arith.constant 0 : index
    %c0_4 = arith.constant 0 : index
    %4 = vector.load %arg3[%c0_3, %c0_4] : memref<1x128xf32, #tpu.memory_space<vmem>>, vector<1x128xf32>
    %5 = vector.broadcast %4 : vector<1x128xf32> to vector<512x128xf32>
    %6 = arith.addf %3, %5 : vector<512x128xf32>
    %cst_5 = arith.constant 0.000000e+00 : f32
    %7 = vector.broadcast %cst_5 : f32 to vector<512x128xf32>
    %8 = arith.maximumf %6, %7 : vector<512x128xf32>
    %9 = arith.truncf %8 : vector<512x128xf32> to vector<512x128xbf16>
    %c0_6 = arith.constant 0 : index
    %c0_7 = arith.constant 0 : index
    %10 = vector.load %arg4[%c0_6, %c0_7] : memref<128x128xbf16, #tpu.memory_space<vmem>>, vector<128x128xbf16>
    %cst_8 = arith.constant dense<0.000000e+00> : vector<512x128xf32>
    %11 = tpu.matmul %9, %10, %cst_8 {dimension_numbers = #tpu.dot_dimension_numbers<[1], [0], [0], [1], [0, 0, 1, 1], [], []>} : vector<512x128xbf16>, vector<128x128xbf16>, vector<512x128xf32> -> vector<512x128xf32>
    %c0_9 = arith.constant 0 : index
    %c0_10 = arith.constant 0 : index
    %12 = vector.load %arg5[%c0_9, %c0_10] : memref<1x128xf32, #tpu.memory_space<vmem>>, vector<1x128xf32>
    %13 = vector.broadcast %12 : vector<1x128xf32> to vector<512x128xf32>
    %14 = arith.addf %11, %13 : vector<512x128xf32>
    %cst_11 = arith.constant 0.000000e+00 : f32
    %15 = vector.broadcast %cst_11 : f32 to vector<512x128xf32>
    %16 = arith.maximumf %14, %15 : vector<512x128xf32>
    %17 = arith.truncf %16 : vector<512x128xf32> to vector<512x128xbf16>
    %c0_12 = arith.constant 0 : index
    %c0_13 = arith.constant 0 : index
    %18 = vector.load %arg6[%c0_12, %c0_13] : memref<128x128xbf16, #tpu.memory_space<vmem>>, vector<128x128xbf16>
    %cst_14 = arith.constant dense<0.000000e+00> : vector<512x128xf32>
    %19 = tpu.matmul %17, %18, %cst_14 {dimension_numbers = #tpu.dot_dimension_numbers<[1], [0], [0], [1], [0, 0, 1, 1], [], []>} : vector<512x128xbf16>, vector<128x128xbf16>, vector<512x128xf32> -> vector<512x128xf32>
    %c0_15 = arith.constant 0 : index
    %c0_16 = arith.constant 0 : index
    %20 = vector.load %arg7[%c0_15, %c0_16] : memref<1x128xf32, #tpu.memory_space<vmem>>, vector<1x128xf32>
    %21 = vector.broadcast %20 : vector<1x128xf32> to vector<512x128xf32>
    %22 = arith.addf %19, %21 : vector<512x128xf32>
    %cst_17 = arith.constant dense<0xFF800000> : vector<512xf32>
    %23 = vector.multi_reduction <maximumf>, %22, %cst_17 [1] : vector<512x128xf32> to vector<512xf32>
    %24 = vector.shape_cast %23 : vector<512xf32> to vector<512x1xf32>
    %25 = vector.broadcast %24 : vector<512x1xf32> to vector<512x128xf32>
    %26 = arith.subf %22, %25 : vector<512x128xf32>
    %27 = math.exp %26 : vector<512x128xf32>
    %cst_18 = arith.constant dense<0.000000e+00> : vector<512xf32>
    %28 = vector.multi_reduction <add>, %27, %cst_18 [1] : vector<512x128xf32> to vector<512xf32>
    %29 = vector.shape_cast %28 : vector<512xf32> to vector<512x1xf32>
    %30 = tpu.reciprocal %29 {approx = true} : vector<512x1xf32> -> vector<512x1xf32>
    %31 = vector.broadcast %30 : vector<512x1xf32> to vector<512x128xf32>
    %32 = arith.mulf %27, %31 : vector<512x128xf32>
    %33 = vector.extract_strided_slice %32 {offsets = [0, 0], sizes = [512, 10], strides = [1, 1]} : vector<512x128xf32> to vector<512x10xf32>
    %c0_19 = arith.constant 0 : index
    %c0_20 = arith.constant 0 : index
    %34 = vector.load %arg8[%c0_19, %c0_20] : memref<512x10xf32, #tpu.memory_space<vmem>>, vector<512x10xf32>
    tpu.vector_store %arg8[%c0_19, %c0_20], %33 {strides = array<i32>} : memref<512x10xf32, #tpu.memory_space<vmem>>, vector<512x10xf32>,
    return
  }
  func.func @transform_0(%arg0: i32) -> (i32, i32) {
    %c0_i32 = arith.constant 0 : i32
    %c0_i32_0 = arith.constant 0 : i32
    return %arg0, %c0_i32 : i32, i32
  }
  func.func @transform_1(%arg0: i32) -> (i32, i32) {
    %c0_i32 = arith.constant 0 : i32
    %c0_i32_0 = arith.constant 0 : i32
    %c0_i32_1 = arith.constant 0 : i32
    return %c0_i32, %c0_i32_0 : i32, i32
  }
  func.func @transform_2(%arg0: i32) -> (i32, i32) {
    %c0_i32 = arith.constant 0 : i32
    %c0_i32_0 = arith.constant 0 : i32
    %c0_i32_1 = arith.constant 0 : i32
    return %c0_i32, %c0_i32_0 : i32, i32
  }
  func.func @transform_3(%arg0: i32) -> (i32, i32) {
    %c0_i32 = arith.constant 0 : i32
    %c0_i32_0 = arith.constant 0 : i32
    %c0_i32_1 = arith.constant 0 : i32
    return %c0_i32, %c0_i32_0 : i32, i32
  }
  func.func @transform_4(%arg0: i32) -> (i32, i32) {
    %c0_i32 = arith.constant 0 : i32
    %c0_i32_0 = arith.constant 0 : i32
    %c0_i32_1 = arith.constant 0 : i32
    return %c0_i32, %c0_i32_0 : i32, i32
  }
  func.func @transform_5(%arg0: i32) -> (i32, i32) {
    %c0_i32 = arith.constant 0 : i32
    %c0_i32_0 = arith.constant 0 : i32
    %c0_i32_1 = arith.constant 0 : i32
    return %c0_i32, %c0_i32_0 : i32, i32
  }
  func.func @transform_6(%arg0: i32) -> (i32, i32) {
    %c0_i32 = arith.constant 0 : i32
    %c0_i32_0 = arith.constant 0 : i32
    %c0_i32_1 = arith.constant 0 : i32
    return %c0_i32, %c0_i32_0 : i32, i32
  }
  func.func @transform_7(%arg0: i32) -> (i32, i32) {
    %c0_i32 = arith.constant 0 : i32
    %c0_i32_0 = arith.constant 0 : i32
    return %arg0, %c0_i32 : i32, i32
  }
}

</mosaic_0001>

<bundles_post_ra>
// kernel: tpu_custom_call.1
= control target key start
LH: loop header
LB: loop body
LE: loop exit
PB: predicated region body
PF: predicated region fallthrough
CT: control target
= control target key end

     0   :  { %vm146_vm0 = vcmask 261120   ;;  %vm2020_vm1 = vcmask 80896   ;;  %s4088_s1 = inlined_call_operand.vmem [shape: bf16[32,128], index: 1, kind: input, shape index: {}]   ;;  %s4089_s0 = inlined_call_operand.vmem [shape: f32[512,32], index: 0, kind: input, shape index: {}]   ;;  %s4090_s3 = inlined_call_operand.vmem [shape: bf16[128,128], index: 3, kind: input, shape index: {}]   ;;  %s4091_s2 = inlined_call_operand.vmem [shape: f32[1,128], index: 2, kind: input, shape index: {}]   ;;  %s4092_s5 = inlined_call_operand.vmem [shape: bf16[128,128], index: 5, kind: input, shape index: {}]   ;;  %s4093_s4 = inlined_call_operand.vmem [shape: f32[1,128], index: 4, kind: input, shape index: {}]   ;;  %s4094_s6 = inlined_call_operand.vmem [shape: f32[1,128], index: 6, kind: input, shape index: {}]   ;;  %s4095_s7 = inlined_call_operand.vmem [shape: f32[512,10], index: 7, kind: output, shape index: {}]  }
   0x1   :  { %v2488_v0 = vld [vmem:[%s4088_s1] sm:$0xff]   ;;  %v2489_v1 = vld [vmem:[%s4088_s1 + $0x8] sm:$0xff]   ;;  %v29_v5 = vld [vmem:[%s4089_s0 + $0x10] sm:$0xff] }
   0x2   :  { %2256 = vmatprep.subr.bf16.mxu0 %v2488_v0  ;;  %v27_v2 = vld [vmem:[%s4089_s0] sm:$0xff]  ;;  %v28_v3 = vld [vmem:[%s4089_s0 + $0x8] sm:$0xff]  ;;  %2484 = vmatprep.subr.bf16.mxu1 %v2488_v0  ;;  %v30_v6 = vld [vmem:[%s4089_s0 + $0x18] sm:$0xff] }
   0x3   :  { %2257 = vmatpush3.bf16.msra.mxu0 %v2488_v0  ;;  %v91_v4 = vpack.c.bf16 %v28_v3, %v27_v2  ;;  %2486 = vmatpush3.bf16.msra.mxu1 %v2488_v0  ;;  %v31_v7 = vld [vmem:[%s4089_s0 + $0x20] sm:$0xff]  ;;  %v32_v8 = vld [vmem:[%s4089_s0 + $0x28] sm:$0xff]  ;;  %v92_v9 = vpack.c.bf16 %v30_v6, %v29_v5  ;;  %v33_v11 = vld [vmem:[%s4089_s0 + $0x30] sm:$0xff] }
   0x4   :  { %2258 = vmatprep.subr.bf16.mxu0 %v2489_v1  ;;  %2485 = vmatprep.subr.bf16.mxu1 %v2489_v1  ;;  %v93_v10 = vpack.c.bf16 %v32_v8, %v31_v7  ;;  %v34_v12 = vld [vmem:[%s4089_s0 + $0x38] sm:$0xff]  ;;  %v35_v13 = vld [vmem:[%s4089_s0 + $0x40] sm:$0xff]  ;;  %v36_v14 = vld [vmem:[%s4089_s0 + $0x48] sm:$0xff] }
   0x5   :  { %2260 = vmatprep.mubr.msk.bf16.mxu0 %vm146_vm0, %v91_v4  ;;  %v59_v15 = vld [vmem:[%s4089_s0 + $0x100] sm:$0xff]  ;;  %v60_v16 = vld [vmem:[%s4089_s0 + $0x108] sm:$0xff]  ;;  %v61_v17 = vld [vmem:[%s4089_s0 + $0x110] sm:$0xff]  ;;  %v94_v19 = vpack.c.bf16 %v34_v12, %v33_v11  ;;  %v95_v24 = vpack.c.bf16 %v36_v14, %v35_v13 }
   0x6   :  { %v62_v18 = vld [vmem:[%s4089_s0 + $0x118] sm:$0xff]  ;;  %v107_v20 = vpack.c.bf16 %v60_v16, %v59_v15  ;;  %v63_v22 = vld [vmem:[%s4089_s0 + $0x120] sm:$0xff]  ;;  %v64_v23 = vld [vmem:[%s4089_s0 + $0x128] sm:$0xff] }
   0x7   :  { %2259 = vmatpush3.bf16.msra.mxu0 %v2489_v1  ;;  %2487 = vmatpush3.bf16.msra.mxu1 %v2489_v1  ;;  %v108_v21 = vpack.c.bf16 %v62_v18, %v61_v17  ;;  %v109_v25 = vpack.c.bf16 %v64_v23, %v63_v22  ;;  %v37_v26 = vld [vmem:[%s4089_s0 + $0x50] sm:$0xff]  ;;  %v66_v28 = vld [vmem:[%s4089_s0 + $0x138] sm:$0xff]  ;;  %v67_v30 = vld [vmem:[%s4089_s0 + $0x140] sm:$0xff] }
   0x8   :  { %2292 = vmatprep.mubr.msk.bf16.mxu1 %vm146_vm0, %v107_v20  ;;  %v65_v27 = vld [vmem:[%s4089_s0 + $0x130] sm:$0xff]  ;;  %v38_v29 = vld [vmem:[%s4089_s0 + $0x58] sm:$0xff]  ;;  %v68_v31 = vld [vmem:[%s4089_s0 + $0x148] sm:$0xff] }
   0x9   :  { %v39_v32 = vld [vmem:[%s4089_s0 + $0x60] sm:$0xff]  ;;  %v40_v33 = vld [vmem:[%s4089_s0 + $0x68] sm:$0xff]  ;;  %v110_v34 = vpack.c.bf16 %v66_v28, %v65_v27  ;;  %v96_v35 = vpack.c.bf16 %v38_v29, %v37_v26  ;;  %v111_v36 = vpack.c.bf16 %v68_v31, %v67_v30  ;;  %v69_v38 = vld [vmem:[%s4089_s0 + $0x150] sm:$0xff] }
   0xa   :  { %2261 = vmatmul.mubr.msk.bf16.vlgmr.msra.gmra.mrb[0].mxu0 %vm146_vm0, %v92_v9  ;;  %2293 = vmatmul.mubr.msk.bf16.vlgmr.msra.gmra.mrb[0].mxu1 %vm146_vm0, %v108_v21  ;;  %v97_v37 = vpack.c.bf16 %v40_v33, %v39_v32  ;;  %v70_v39 = vld [vmem:[%s4089_s0 + $0x158] sm:$0xff]  ;;  %v2490_v40 = vld [vmem:[%s4090_s3] sm:$0xff]   ;;  %v41_v41 = vld [vmem:[%s4089_s0 + $0x70] sm:$0xff] }
   0xb   :  { %2264 = vmatprep.mubr.msk.bf16.mxu0 %vm146_vm0, %v93_v10  ;;  %2296 = vmatprep.mubr.msk.bf16.mxu1 %vm146_vm0, %v109_v25  ;;  %v42_v42 = vld [vmem:[%s4089_s0 + $0x78] sm:$0xff]  ;;  %v2491_v43 = vld [vmem:[%s4090_s3 + $0x8] sm:$0xff]   ;;  %v43_v44 = vld [vmem:[%s4089_s0 + $0x80] sm:$0xff]  ;;  %v112_v48 = vpack.c.bf16 %v70_v39, %v69_v38 }
   0xc   :  { %v71_v45 = vld [vmem:[%s4089_s0 + $0x160] sm:$0xff]  ;;  %v72_v46 = vld [vmem:[%s4089_s0 + $0x168] sm:$0xff]  ;;  %2324 = vmatprep.subr.bf16.mxu1 %v2490_v40  ;;  %v2492_v49 = vld [vmem:[%s4090_s3 + $0x10] sm:$0xff]   ;;  %v98_v50 = vpack.c.bf16 %v42_v42, %v41_v41 }
   0xd   :  { %v44_v47 = vld [vmem:[%s4089_s0 + $0x88] sm:$0xff]  ;;  %2325 = vmatpush3.bf16.msra.mxu1 %v2490_v40  ;;  %v113_v51 = vpack.c.bf16 %v72_v46, %v71_v45  ;;  %v2493_v53 = vld [vmem:[%s4090_s3 + $0x18] sm:$0xff]   ;;  %v45_v54 = vld [vmem:[%s4089_s0 + $0x90] sm:$0xff] }
   0xe   :  { %2326 = vmatprep.subr.bf16.mxu1 %v2491_v43  ;;  %v99_v52 = vpack.c.bf16 %v44_v47, %v43_v44  ;;  %v73_v55 = vld [vmem:[%s4089_s0 + $0x170] sm:$0xff]  ;;  %v74_v56 = vld [vmem:[%s4089_s0 + $0x178] sm:$0xff]  ;;  %v75_v58 = vld [vmem:[%s4089_s0 + $0x180] sm:$0xff] }
   0xf   :  { %v46_v57 = vld [vmem:[%s4089_s0 + $0x98] sm:$0xff]  ;;  %v76_v59 = vld [vmem:[%s4089_s0 + $0x188] sm:$0xff]  ;;  %v47_v60 = vld [vmem:[%s4089_s0 + $0xa0] sm:$0xff]  ;;  %v114_v62 = vpack.c.bf16 %v74_v56, %v73_v55 }
  0x10   :  { %v48_v61 = vld [vmem:[%s4089_s0 + $0xa8] sm:$0xff]  ;;  %v2494_v63 = vld [vmem:[%s4090_s3 + $0x20] sm:$0xff]   ;;  %v100_v0 = vpack.c.bf16 %v46_v57, %v45_v54  ;;  %v115_v1 = vpack.c.bf16 %v76_v59, %v75_v58  ;;  %v49_v4 = vld [vmem:[%s4089_s0 + $0xb0] sm:$0xff] }
  0x11   :  { %2327 = vmatpush3.bf16.msra.mxu1 %v2491_v43  ;;  %v101_v2 = vpack.c.bf16 %v48_v61, %v47_v60  ;;  %v2495_v3 = vld [vmem:[%s4090_s3 + $0x28] sm:$0xff]   ;;  %v77_v5 = vld [vmem:[%s4089_s0 + $0x190] sm:$0xff]  ;;  %v78_v6 = vld [vmem:[%s4089_s0 + $0x198] sm:$0xff] }
  0x12   :  { %2265 = vmatmul.mubr.msk.bf16.gmra.mrb[4].mxu0 %vm146_vm0, %v94_v19  ;;  %2297 = vmatmul.mubr.msk.bf16.gmra.mrb[4].mxu1 %vm146_vm0, %v110_v34  ;;  %v50_v7 = vld [vmem:[%s4089_s0 + $0xb8] sm:$0xff]  ;;  %v79_v8 = vld [vmem:[%s4089_s0 + $0x1a0] sm:$0xff]  ;;  %v80_v9 = vld [vmem:[%s4089_s0 + $0x1a8] sm:$0xff]  ;;  %v116_v12 = vpack.c.bf16 %v78_v6, %v77_v5 }
  0x13   :  { %2268 = vmatprep.mubr.msk.bf16.mxu0 %vm146_vm0, %v95_v24  ;;  %2300 = vmatprep.mubr.msk.bf16.mxu1 %vm146_vm0, %v111_v36  ;;  %v51_v10 = vld [vmem:[%s4089_s0 + $0xc0] sm:$0xff]  ;;  %v52_v11 = vld [vmem:[%s4089_s0 + $0xc8] sm:$0xff]  ;;  %v2496_v13 = vld [vmem:[%s4090_s3 + $0x30] sm:$0xff]   ;;  %v102_v14 = vpack.c.bf16 %v50_v7, %v49_v4  ;;  %v117_v15 = vpack.c.bf16 %v80_v9, %v79_v8 }
  0x14   :  { %2328 = vmatprep.subr.bf16.mxu1 %v2492_v49  ;;  %v103_v16 = vpack.c.bf16 %v52_v11, %v51_v10  ;;  %v53_v17 = vld [vmem:[%s4089_s0 + $0xd0] sm:$0xff]  ;;  %v82_v19 = vld [vmem:[%s4089_s0 + $0x1b8] sm:$0xff]  ;;  %v83_v21 = vld [vmem:[%s4089_s0 + $0x1c0] sm:$0xff] }
  0x15   :  { %2329 = vmatpush3.bf16.msra.mxu1 %v2492_v49  ;;  %v81_v18 = vld [vmem:[%s4089_s0 + $0x1b0] sm:$0xff]  ;;  %v54_v20 = vld [vmem:[%s4089_s0 + $0xd8] sm:$0xff]  ;;  %v84_v22 = vld [vmem:[%s4089_s0 + $0x1c8] sm:$0xff] }
  0x16   :  { %2330 = vmatprep.subr.bf16.mxu1 %v2493_v53  ;;  %v55_v23 = vld [vmem:[%s4089_s0 + $0xe0] sm:$0xff]  ;;  %v56_v24 = vld [vmem:[%s4089_s0 + $0xe8] sm:$0xff]  ;;  %v118_v25 = vpack.c.bf16 %v82_v19, %v81_v18  ;;  %v104_v26 = vpack.c.bf16 %v54_v20, %v53_v17  ;;  %v119_v27 = vpack.c.bf16 %v84_v22, %v83_v21  ;;  %v57_v29 = vld [vmem:[%s4089_s0 + $0xf0] sm:$0xff] }
  0x17   :  { %v105_v28 = vpack.c.bf16 %v56_v24, %v55_v23  ;;  %v85_v30 = vld [vmem:[%s4089_s0 + $0x1d0] sm:$0xff]  ;;  %v86_v31 = vld [vmem:[%s4089_s0 + $0x1d8] sm:$0xff]  ;;  %v87_v33 = vld [vmem:[%s4089_s0 + $0x1e0] sm:$0xff] }
  0x18   :  { %v58_v32 = vld [vmem:[%s4089_s0 + $0xf8] sm:$0xff]  ;;  %v88_v34 = vld [vmem:[%s4089_s0 + $0x1e8] sm:$0xff]  ;;  %v89_v38 = vld [vmem:[%s4089_s0 + $0x1f0] sm:$0xff] }
  0x19   :  { %2331 = vmatpush3.bf16.msra.mxu1 %v2493_v53  ;;  %v106_v36 = vpack.c.bf16 %v58_v32, %v57_v29  ;;  %v90_v39 = vld [vmem:[%s4089_s0 + $0x1f8] sm:$0xff]  ;;  %v3059_v42 = vld [vmem:[%s4091_s2] ss:$0 sm:$0xff]  ;;  %v2499_v54 = vld [vmem:[%s4092_s5 + $0x8] sm:$0xff]  }
  0x1a   :  { %2269 = vmatmul.mubr.msk.bf16.gmra.mrb[8].mxu0 %vm146_vm0, %v96_v35  ;;  %2301 = vmatmul.mubr.msk.bf16.gmra.mrb[8].mxu1 %vm146_vm0, %v112_v48  ;;  %v120_v35 = vpack.c.bf16 %v86_v31, %v85_v30  ;;  %v122_v40 = vpack.c.bf16 %v90_v39, %v89_v38  ;;  %v2497_v41 = vld [vmem:[%s4090_s3 + $0x38] sm:$0xff]   ;;  %v2500_v59 = vld [vmem:[%s4092_s5 + $0x10] sm:$0xff]   ;;  %v2502_v29 = vld [vmem:[%s4092_s5 + $0x20] sm:$0xff]  }
  0x1b   :  { %2272 = vmatprep.mubr.msk.bf16.mxu0 %vm146_vm0, %v97_v37  ;;  %2304 = vmatprep.mubr.msk.bf16.mxu1 %vm146_vm0, %v113_v51  ;;  %v121_v37 = vpack.c.bf16 %v88_v34, %v87_v33 }
  0x1c   :  { %2332 = vmatprep.subr.bf16.mxu1 %v2494_v63 }
  0x1d   :  { %2333 = vmatpush3.bf16.msra.mxu1 %v2494_v63 }
  0x1e   :  { %2334 = vmatprep.subr.bf16.mxu1 %v2495_v3 }
  0x21   :  { %2335 = vmatpush3.bf16.msra.mxu1 %v2495_v3 }
  0x22   :  { %2273 = vmatmul.mubr.msk.bf16.gmra.mrb[12].mxu0 %vm146_vm0, %v98_v50  ;;  %2305 = vmatmul.mubr.msk.bf16.gmra.mrb[12].mxu1 %vm146_vm0, %v114_v62 }
  0x23   :  { %2276 = vmatprep.mubr.msk.bf16.mxu0 %vm146_vm0, %v99_v52  ;;  %2308 = vmatprep.mubr.msk.bf16.mxu1 %vm146_vm0, %v115_v1  ;;  %v2498_v52 = vld [vmem:[%s4092_s5] sm:$0xff]  }
  0x24   :  { %2336 = vmatprep.subr.bf16.mxu1 %v2496_v13  ;;  %2404 = vmatprep.subr.bf16.mxu0 %v2498_v52 }
  0x25   :  { %2337 = vmatpush3.bf16.msra.mxu1 %v2496_v13  ;;  %2405 = vmatpush3.bf16.msra.mxu0 %v2498_v52 }
  0x26   :  { %2338 = vmatprep.subr.bf16.mxu1 %v2497_v41  ;;  %2406 = vmatprep.subr.bf16.mxu0 %v2499_v54 }
  0x29   :  { %2339 = vmatpush3.bf16.msra.mxu1 %v2497_v41  ;;  %2407 = vmatpush3.bf16.msra.mxu0 %v2499_v54 }
  0x2a   :  { %2277 = vmatmul.mubr.msk.bf16.gmra.mrb[16].mxu0 %vm146_vm0, %v100_v0  ;;  %2309 = vmatmul.mubr.msk.bf16.gmra.mrb[16].mxu1 %vm146_vm0, %v116_v12 }
  0x2b   :  { %2280 = vmatprep.mubr.msk.bf16.mxu0 %vm146_vm0, %v101_v2  ;;  %2312 = vmatprep.mubr.msk.bf16.mxu1 %vm146_vm0, %v117_v15  ;;  %v2501_v15 = vld [vmem:[%s4092_s5 + $0x18] sm:$0xff]  }
  0x2c   :  { %2408 = vmatprep.subr.bf16.mxu0 %v2500_v59 }
  0x2d   :  { %2409 = vmatpush3.bf16.msra.mxu0 %v2500_v59 }
  0x2e   :  { %2410 = vmatprep.subr.bf16.mxu0 %v2501_v15 }
  0x31   :  { %2411 = vmatpush3.bf16.msra.mxu0 %v2501_v15 }
  0x32   :  { %2281 = vmatmul.mubr.msk.bf16.gmra.mrb[20].mxu0 %vm146_vm0, %v102_v14  ;;  %2313 = vmatmul.mubr.msk.bf16.gmra.mrb[20].mxu1 %vm146_vm0, %v118_v25 }
  0x33   :  { %2284 = vmatprep.mubr.msk.bf16.mxu0 %vm146_vm0, %v103_v16  ;;  %2316 = vmatprep.mubr.msk.bf16.mxu1 %vm146_vm0, %v119_v27 }
  0x34   :  { %2412 = vmatprep.subr.bf16.mxu0 %v2502_v29 }
  0x35   :  { %2413 = vmatpush3.bf16.msra.mxu0 %v2502_v29 }
  0x3a   :  { %2285 = vmatmul.mubr.msk.bf16.gmra.mrb[24].mxu0 %vm146_vm0, %v104_v26  ;;  %2317 = vmatmul.mubr.msk.bf16.gmra.mrb[24].mxu1 %vm146_vm0, %v120_v35 }
  0x3b   :  { %2288 = vmatprep.mubr.msk.bf16.mxu0 %vm146_vm0, %v105_v28  ;;  %2320 = vmatprep.mubr.msk.bf16.mxu1 %vm146_vm0, %v121_v37 }
  0x42   :  { %2289 = vmatmul.mubr.msk.bf16.gmra.mrb[28].mxu0 %vm146_vm0, %v106_v36  ;;  %2321 = vmatmul.mubr.msk.bf16.gmra.mrb[28].mxu1 %vm146_vm0, %v122_v40 }
  0xdd   :  { %v2262_v43 = vpop.f32.mrb[0].mxu0  ;;  %v2294_v58 = vpop.f32.mrb[0].mxu1 }
  0xde   :  { %v286_v44 = vadd.f32 %v2262_v43, %v3059_v42  ;;  %v277_v45 = vpop.f32.mrb[1].mxu0  ;;  %v414_v62 = vadd.f32 %v2294_v58, %v3059_v42  ;;  %v405_v63 = vpop.f32.mrb[1].mxu1 }
  0xdf   :  { %v278_v46 = vadd.f32 %v3059_v42, %v277_v45  ;;  %v2263_v47 = vpop.f32.mrb[2].mxu0  ;;  %v406_v2 = vadd.f32 %v3059_v42, %v405_v63  ;;  %v2295_v3 = vpop.f32.mrb[2].mxu1 }
  0xe0   :  { %v289_v48 = vadd.f32 %v2263_v47, %v3059_v42  ;;  %v280_v49 = vpop.f32.mrb[3].mxu0  ;;  %v534_v50 = vmax.f32 %v286_v44, 0.0  ;;  %v566_v6 = vmax.f32 %v414_v62, 0.0  ;;  %v417_v7 = vadd.f32 %v2295_v3, %v3059_v42  ;;  %v408_v8 = vpop.f32.mrb[3].mxu1 }
  0xe1   :  { %v281_v51 = vadd.f32 %v3059_v42, %v280_v49  ;;  %v532_v55 = vmax.f32 %v278_v46, 0.0  ;;  %v564_v11 = vmax.f32 %v406_v2, 0.0  ;;  %v409_v12 = vadd.f32 %v3059_v42, %v408_v8  ;;  %v2503_v46 = vld [vmem:[%s4092_s5 + $0x28] sm:$0xff]  }
  0xe2   :  { %v535_v53 = vmax.f32 %v289_v48, 0.0  ;;  %v567_v14 = vmax.f32 %v417_v7, 0.0  ;;  %2414 = vmatprep.subr.bf16.mxu0 %v2503_v46 }
  0xe3   :  { %v533_v56 = vmax.f32 %v281_v51, 0.0  ;;  %v565_v18 = vmax.f32 %v409_v12, 0.0  ;;  %2415 = vmatpush3.bf16.msra.mxu0 %v2503_v46 }
  0xe4   :  { %v597_v57 = vpack.c.bf16 %v535_v53, %v534_v50  ;;  %v3085_v21 = vpack.c.bf16 %v567_v14, %v566_v6 }
  0xe5   :  { %v596_v60 = vpack.c.bf16 %v533_v56, %v532_v55  ;;  %v2266_v61 = vpop.f32.mrb[4].mxu0  ;;  %v3087_v23 = vpack.c.bf16 %v565_v18, %v564_v11  ;;  %v2298_v24 = vpop.f32.mrb[4].mxu1 }
  0xe6   :  { %v302_v0 = vadd.f32 %v2266_v61, %v3059_v42  ;;  %v293_v1 = vpop.f32.mrb[5].mxu0  ;;  %v430_v27 = vadd.f32 %v2298_v24, %v3059_v42  ;;  %v421_v28 = vpop.f32.mrb[5].mxu1 }
  0xe7   :  { %v294_v4 = vadd.f32 %v3059_v42, %v293_v1  ;;  %v2267_v5 = vpop.f32.mrb[6].mxu0  ;;  %2340 = vmatprep.mubr.bf16.mxu1 %v596_v60  ;;  %v422_v32 = vadd.f32 %v3059_v42, %v421_v28  ;;  %v2299_v33 = vpop.f32.mrb[6].mxu1  ;;  %v2504_v60 = vld [vmem:[%s4092_s5 + $0x30] sm:$0xff]  }
  0xe8   :  { %v305_v9 = vadd.f32 %v2267_v5, %v3059_v42  ;;  %v296_v10 = vpop.f32.mrb[7].mxu0  ;;  %2341 = vmatmul.mubr.bf16.vlgmr.msra.gmra.mrb[32].mxu1 %v597_v57  ;;  %v538_v16 = vmax.f32 %v302_v0, 0.0  ;;  %v570_v36 = vmax.f32 %v430_v27, 0.0  ;;  %v433_v37 = vadd.f32 %v2299_v33, %v3059_v42  ;;  %v424_v38 = vpop.f32.mrb[7].mxu1  ;;  %2416 = vmatprep.subr.bf16.mxu0 %v2504_v60 }
  0xe9   :  { %v297_v13 = vadd.f32 %v3059_v42, %v296_v10  ;;  %v536_v19 = vmax.f32 %v294_v4, 0.0  ;;  %v568_v41 = vmax.f32 %v422_v32, 0.0  ;;  %v425_v43 = vadd.f32 %v3059_v42, %v424_v38  ;;  %2417 = vmatpush3.bf16.msra.mxu0 %v2504_v60 }
  0xea   :  { %v539_v17 = vmax.f32 %v305_v9, 0.0  ;;  %v571_v45 = vmax.f32 %v433_v37, 0.0 }
  0xeb   :  { %v537_v20 = vmax.f32 %v297_v13, 0.0  ;;  %v569_v49 = vmax.f32 %v425_v43, 0.0 }
  0xec   :  { %v599_v22 = vpack.c.bf16 %v539_v17, %v538_v16  ;;  %v3103_v52 = vpack.c.bf16 %v571_v45, %v570_v36 }
  0xed   :  { %v598_v25 = vpack.c.bf16 %v537_v20, %v536_v19  ;;  %v2270_v26 = vpop.f32.mrb[8].mxu0  ;;  %v3105_v54 = vpack.c.bf16 %v569_v49, %v568_v41  ;;  %v2302_v55 = vpop.f32.mrb[8].mxu1 }
  0xee   :  { %v318_v30 = vadd.f32 %v2270_v26, %v3059_v42  ;;  %v309_v31 = vpop.f32.mrb[9].mxu0  ;;  %v446_v58 = vadd.f32 %v2302_v55, %v3059_v42  ;;  %v437_v59 = vpop.f32.mrb[9].mxu1 }
  0xef   :  { %v310_v34 = vadd.f32 %v3059_v42, %v309_v31  ;;  %v2271_v35 = vpop.f32.mrb[10].mxu0  ;;  %2344 = vmatprep.mubr.bf16.mxu1 %v598_v25  ;;  %v438_v63 = vadd.f32 %v3059_v42, %v437_v59  ;;  %v2303_v0 = vpop.f32.mrb[10].mxu1 }
  0xf0   :  { %v321_v39 = vadd.f32 %v2271_v35, %v3059_v42  ;;  %v312_v40 = vpop.f32.mrb[11].mxu0  ;;  %2345 = vmatmul.mubr.bf16.gmra.mrb[36].mxu1 %v599_v22  ;;  %v542_v47 = vmax.f32 %v318_v30, 0.0  ;;  %v574_v3 = vmax.f32 %v446_v58, 0.0  ;;  %v449_v4 = vadd.f32 %v2303_v0, %v3059_v42  ;;  %v440_v5 = vpop.f32.mrb[11].mxu1 }
  0xf1   :  { %v313_v44 = vadd.f32 %v3059_v42, %v312_v40  ;;  %v540_v50 = vmax.f32 %v310_v34, 0.0  ;;  %v572_v8 = vmax.f32 %v438_v63, 0.0  ;;  %v441_v9 = vadd.f32 %v3059_v42, %v440_v5 }
  0xf2   :  { %v543_v48 = vmax.f32 %v321_v39, 0.0  ;;  %v575_v11 = vmax.f32 %v449_v4, 0.0 }
  0xf3   :  { %v541_v51 = vmax.f32 %v313_v44, 0.0  ;;  %v573_v14 = vmax.f32 %v441_v9, 0.0 }
  0xf4   :  { %v601_v53 = vpack.c.bf16 %v543_v48, %v542_v47  ;;  %v3118_v17 = vpack.c.bf16 %v575_v11, %v574_v3 }
  0xf5   :  { %v600_v56 = vpack.c.bf16 %v541_v51, %v540_v50  ;;  %v2274_v57 = vpop.f32.mrb[12].mxu0  ;;  %v3120_v19 = vpack.c.bf16 %v573_v14, %v572_v8  ;;  %v2306_v20 = vpop.f32.mrb[12].mxu1 }
  0xf6   :  { %v334_v61 = vadd.f32 %v2274_v57, %v3059_v42  ;;  %v325_v62 = vpop.f32.mrb[13].mxu0  ;;  %v462_v25 = vadd.f32 %v2306_v20, %v3059_v42  ;;  %v453_v26 = vpop.f32.mrb[13].mxu1 }
  0xf7   :  { %v326_v1 = vadd.f32 %v3059_v42, %v325_v62  ;;  %v2275_v2 = vpop.f32.mrb[14].mxu0  ;;  %2348 = vmatprep.mubr.bf16.mxu1 %v600_v56  ;;  %v454_v29 = vadd.f32 %v3059_v42, %v453_v26  ;;  %v2307_v30 = vpop.f32.mrb[14].mxu1 }
  0xf8   :  { %v337_v6 = vadd.f32 %v2275_v2, %v3059_v42  ;;  %v328_v7 = vpop.f32.mrb[15].mxu0  ;;  %2349 = vmatmul.mubr.bf16.gmra.mrb[40].mxu1 %v601_v53  ;;  %v546_v12 = vmax.f32 %v334_v61, 0.0  ;;  %v578_v33 = vmax.f32 %v462_v25, 0.0  ;;  %v465_v34 = vadd.f32 %v2307_v30, %v3059_v42  ;;  %v456_v35 = vpop.f32.mrb[15].mxu1 }
  0xf9   :  { %v329_v10 = vadd.f32 %v3059_v42, %v328_v7  ;;  %v544_v15 = vmax.f32 %v326_v1, 0.0  ;;  %v576_v38 = vmax.f32 %v454_v29, 0.0  ;;  %v457_v39 = vadd.f32 %v3059_v42, %v456_v35 }
  0xfa   :  { %v547_v13 = vmax.f32 %v337_v6, 0.0  ;;  %v579_v41 = vmax.f32 %v465_v34, 0.0 }
  0xfb   :  { %v545_v16 = vmax.f32 %v329_v10, 0.0  ;;  %v577_v45 = vmax.f32 %v457_v39, 0.0 }
  0xfc   :  { %v603_v18 = vpack.c.bf16 %v547_v13, %v546_v12  ;;  %v3130_v48 = vpack.c.bf16 %v579_v41, %v578_v33 }
  0xfd   :  { %v602_v22 = vpack.c.bf16 %v545_v16, %v544_v15  ;;  %v2278_v24 = vpop.f32.mrb[16].mxu0  ;;  %v3132_v50 = vpack.c.bf16 %v577_v45, %v576_v38  ;;  %v2310_v51 = vpop.f32.mrb[16].mxu1 }
  0xfe   :  { %v350_v27 = vadd.f32 %v2278_v24, %v3059_v42  ;;  %v341_v28 = vpop.f32.mrb[17].mxu0  ;;  %v478_v56 = vadd.f32 %v2310_v51, %v3059_v42  ;;  %v469_v57 = vpop.f32.mrb[17].mxu1 }
  0xff   :  { %v342_v31 = vadd.f32 %v3059_v42, %v341_v28  ;;  %v2279_v32 = vpop.f32.mrb[18].mxu0  ;;  %2352 = vmatprep.mubr.bf16.mxu1 %v602_v22  ;;  %v470_v60 = vadd.f32 %v3059_v42, %v469_v57  ;;  %v2311_v61 = vpop.f32.mrb[18].mxu1 }
 0x100   :  { %v353_v36 = vadd.f32 %v2279_v32, %v3059_v42  ;;  %v344_v37 = vpop.f32.mrb[19].mxu0  ;;  %2353 = vmatmul.mubr.bf16.gmra.mrb[44].mxu1 %v603_v18  ;;  %v550_v43 = vmax.f32 %v350_v27, 0.0  ;;  %v582_v0 = vmax.f32 %v478_v56, 0.0  ;;  %v481_v1 = vadd.f32 %v2311_v61, %v3059_v42  ;;  %v472_v2 = vpop.f32.mrb[19].mxu1 }
 0x101   :  { %v345_v40 = vadd.f32 %v3059_v42, %v344_v37  ;;  %v548_v46 = vmax.f32 %v342_v31, 0.0  ;;  %v580_v5 = vmax.f32 %v470_v60, 0.0  ;;  %v473_v6 = vadd.f32 %v3059_v42, %v472_v2 }
 0x102   :  { %v551_v44 = vmax.f32 %v353_v36, 0.0  ;;  %v583_v8 = vmax.f32 %v481_v1, 0.0 }
 0x103   :  { %v549_v47 = vmax.f32 %v345_v40, 0.0  ;;  %v581_v11 = vmax.f32 %v473_v6, 0.0 }
 0x104   :  { %v605_v49 = vpack.c.bf16 %v551_v44, %v550_v43  ;;  %v3142_v14 = vpack.c.bf16 %v583_v8, %v582_v0 }
 0x105   :  { %v604_v53 = vpack.c.bf16 %v549_v47, %v548_v46  ;;  %v2282_v55 = vpop.f32.mrb[20].mxu0  ;;  %v3144_v16 = vpack.c.bf16 %v581_v11, %v580_v5  ;;  %v2314_v18 = vpop.f32.mrb[20].mxu1 }
 0x106   :  { %v366_v58 = vadd.f32 %v2282_v55, %v3059_v42  ;;  %v357_v59 = vpop.f32.mrb[21].mxu0  ;;  %v494_v24 = vadd.f32 %v2314_v18, %v3059_v42  ;;  %v485_v25 = vpop.f32.mrb[21].mxu1 }
 0x107   :  { %v358_v62 = vadd.f32 %v3059_v42, %v357_v59  ;;  %v2283_v63 = vpop.f32.mrb[22].mxu0  ;;  %2356 = vmatprep.mubr.bf16.mxu1 %v604_v53  ;;  %v486_v28 = vadd.f32 %v3059_v42, %v485_v25  ;;  %v2315_v29 = vpop.f32.mrb[22].mxu1 }
 0x108   :  { %v369_v3 = vadd.f32 %v2283_v63, %v3059_v42  ;;  %v360_v4 = vpop.f32.mrb[23].mxu0  ;;  %2357 = vmatmul.mubr.bf16.gmra.mrb[48].mxu1 %v605_v49  ;;  %v554_v9 = vmax.f32 %v366_v58, 0.0  ;;  %v586_v32 = vmax.f32 %v494_v24, 0.0  ;;  %v497_v33 = vadd.f32 %v2315_v29, %v3059_v42  ;;  %v488_v34 = vpop.f32.mrb[23].mxu1 }
 0x109   :  { %v361_v7 = vadd.f32 %v3059_v42, %v360_v4  ;;  %v552_v12 = vmax.f32 %v358_v62, 0.0  ;;  %v584_v37 = vmax.f32 %v486_v28, 0.0  ;;  %v489_v38 = vadd.f32 %v3059_v42, %v488_v34 }
 0x10a   :  { %v555_v10 = vmax.f32 %v369_v3, 0.0  ;;  %v587_v40 = vmax.f32 %v497_v33, 0.0 }
 0x10b   :  { %v553_v13 = vmax.f32 %v361_v7, 0.0  ;;  %v585_v44 = vmax.f32 %v489_v38, 0.0 }
 0x10c   :  { %v607_v15 = vpack.c.bf16 %v555_v10, %v554_v9  ;;  %v3154_v47 = vpack.c.bf16 %v587_v40, %v586_v32 }
 0x10d   :  { %v606_v20 = vpack.c.bf16 %v553_v13, %v552_v12  ;;  %v2286_v22 = vpop.f32.mrb[24].mxu0  ;;  %v622_v51 = vpack.c.bf16 %v585_v44, %v584_v37  ;;  %v2318_v53 = vpop.f32.mrb[24].mxu1 }
 0x10e   :  { %v382_v26 = vadd.f32 %v2286_v22, %v3059_v42  ;;  %v373_v27 = vpop.f32.mrb[25].mxu0  ;;  %v510_v57 = vadd.f32 %v2318_v53, %v3059_v42  ;;  %v501_v58 = vpop.f32.mrb[25].mxu1 }
 0x10f   :  { %v374_v30 = vadd.f32 %v3059_v42, %v373_v27  ;;  %v2287_v31 = vpop.f32.mrb[26].mxu0  ;;  %2360 = vmatprep.mubr.bf16.mxu1 %v606_v20  ;;  %v502_v61 = vadd.f32 %v3059_v42, %v501_v58  ;;  %v2319_v62 = vpop.f32.mrb[26].mxu1 }
 0x110   :  { %v385_v35 = vadd.f32 %v2287_v31, %v3059_v42  ;;  %v376_v36 = vpop.f32.mrb[27].mxu0  ;;  %2361 = vmatmul.mubr.bf16.gmra.mrb[52].mxu1 %v607_v15  ;;  %v558_v41 = vmax.f32 %v382_v26, 0.0  ;;  %v590_v1 = vmax.f32 %v510_v57, 0.0  ;;  %v513_v2 = vadd.f32 %v2319_v62, %v3059_v42  ;;  %v504_v3 = vpop.f32.mrb[27].mxu1 }
 0x111   :  { %v377_v39 = vadd.f32 %v3059_v42, %v376_v36  ;;  %v556_v45 = vmax.f32 %v374_v30, 0.0  ;;  %v588_v6 = vmax.f32 %v502_v61, 0.0  ;;  %v505_v7 = vadd.f32 %v3059_v42, %v504_v3 }
 0x112   :  { %v559_v43 = vmax.f32 %v385_v35, 0.0  ;;  %v591_v9 = vmax.f32 %v513_v2, 0.0 }
 0x113   :  { %v557_v46 = vmax.f32 %v377_v39, 0.0  ;;  %v589_v12 = vmax.f32 %v505_v7, 0.0 }
 0x114   :  { %v609_v49 = vpack.c.bf16 %v559_v43, %v558_v41  ;;  %v625_v18 = vpack.c.bf16 %v591_v9, %v590_v1 }
 0x115   :  { %v608_v55 = vpack.c.bf16 %v557_v46, %v556_v45  ;;  %v2290_v56 = vpop.f32.mrb[28].mxu0  ;;  %v624_v22 = vpack.c.bf16 %v589_v12, %v588_v6  ;;  %v2322_v24 = vpop.f32.mrb[28].mxu1 }
 0x116   :  { %v398_v59 = vadd.f32 %v2290_v56, %v3059_v42  ;;  %v389_v60 = vpop.f32.mrb[29].mxu0  ;;  %v526_v26 = vadd.f32 %v2322_v24, %v3059_v42  ;;  %v517_v27 = vpop.f32.mrb[29].mxu1 }
 0x117   :  { %v390_v63 = vadd.f32 %v3059_v42, %v389_v60  ;;  %v2291_v0 = vpop.f32.mrb[30].mxu0  ;;  %2364 = vmatprep.mubr.bf16.mxu1 %v608_v55  ;;  %v518_v28 = vadd.f32 %v3059_v42, %v517_v27  ;;  %v2323_v29 = vpop.f32.mrb[30].mxu1 }
 0x118   :  { %v401_v4 = vadd.f32 %v2291_v0, %v3059_v42  ;;  %v392_v5 = vpop.f32.mrb[31].mxu0  ;;  %2365 = vmatmul.mubr.bf16.gmra.mrb[56].mxu1 %v609_v49  ;;  %v562_v10 = vmax.f32 %v398_v59, 0.0  ;;  %v594_v30 = vmax.f32 %v526_v26, 0.0  ;;  %v529_v31 = vadd.f32 %v2323_v29, %v3059_v42  ;;  %v520_v32 = vpop.f32.mrb[31].mxu1 }
 0x119   :  { %v393_v8 = vadd.f32 %v3059_v42, %v392_v5  ;;  %v560_v13 = vmax.f32 %v390_v63, 0.0  ;;  %v592_v33 = vmax.f32 %v518_v28, 0.0  ;;  %v521_v34 = vadd.f32 %v3059_v42, %v520_v32  ;;  %v2505_v42 = vld [vmem:[%s4092_s5 + $0x38] sm:$0xff]  }
 0x11a   :  { %v563_v11 = vmax.f32 %v401_v4, 0.0  ;;  %v595_v35 = vmax.f32 %v529_v31, 0.0  ;;  %2418 = vmatprep.subr.bf16.mxu0 %v2505_v42 }
 0x11b   :  { %v561_v15 = vmax.f32 %v393_v8, 0.0  ;;  %v593_v36 = vmax.f32 %v521_v34, 0.0  ;;  %2419 = vmatpush3.bf16.msra.mxu0 %v2505_v42 }
 0x11c   :  { %v611_v20 = vpack.c.bf16 %v563_v11, %v562_v10  ;;  %v627_v37 = vpack.c.bf16 %v595_v35, %v594_v30 }
 0x11d   :  { %v610_v25 = vpack.c.bf16 %v561_v15, %v560_v13  ;;  %v626_v38 = vpack.c.bf16 %v593_v36, %v592_v33 }
 0x11f   :  { %2368 = vmatprep.mubr.bf16.mxu1 %v610_v25 }
 0x120   :  { %2369 = vmatmul.mubr.bf16.gmra.mrb[60].mxu1 %v611_v20 }
 0x121   :  { %2372 = vmatprep.mubr.bf16.mxu1 %v3087_v23 }
 0x128   :  { %2373 = vmatmul.mubr.bf16.gmra.mrb[64].mxu1 %v3085_v21  ;;  %v3185_v21 = vld [vmem:[%s4093_s4] ss:$0 sm:$0xff] }
 0x129   :  { %2376 = vmatprep.mubr.bf16.mxu1 %v3105_v54 }
 0x130   :  { %2377 = vmatmul.mubr.bf16.gmra.mrb[68].mxu1 %v3103_v52 }
 0x131   :  { %2380 = vmatprep.mubr.bf16.mxu1 %v3120_v19 }
 0x138   :  { %2381 = vmatmul.mubr.bf16.gmra.mrb[72].mxu1 %v3118_v17 }
 0x139   :  { %2384 = vmatprep.mubr.bf16.mxu1 %v3132_v50 }
 0x140   :  { %2385 = vmatmul.mubr.bf16.gmra.mrb[76].mxu1 %v3130_v48 }
 0x141   :  { %2388 = vmatprep.mubr.bf16.mxu1 %v3144_v16 }
 0x148   :  { %2389 = vmatmul.mubr.bf16.gmra.mrb[80].mxu1 %v3142_v14 }
 0x149   :  { %2392 = vmatprep.mubr.bf16.mxu1 %v622_v51 }
 0x150   :  { %2393 = vmatmul.mubr.bf16.gmra.mrb[84].mxu1 %v3154_v47 }
 0x151   :  { %2396 = vmatprep.mubr.bf16.mxu1 %v624_v22 }
 0x158   :  { %2397 = vmatmul.mubr.bf16.gmra.mrb[88].mxu1 %v625_v18 }
 0x159   :  { %2400 = vmatprep.mubr.bf16.mxu1 %v626_v38 }
 0x160   :  { %2401 = vmatmul.mubr.bf16.gmra.mrb[92].mxu1 %v627_v37 }
 0x1bb   :  { %v2342_v23 = vpop.f32.mrb[32].mxu1 }
 0x1bc   :  { %v742_v52 = vadd.f32 %v2342_v23, %v3185_v21  ;;  %v733_v54 = vpop.f32.mrb[33].mxu1 }
 0x1bd   :  { %v734_v17 = vadd.f32 %v3185_v21, %v733_v54  ;;  %v2343_v19 = vpop.f32.mrb[34].mxu1 }
 0x1be   :  { %v745_v48 = vadd.f32 %v2343_v19, %v3185_v21  ;;  %v736_v50 = vpop.f32.mrb[35].mxu1  ;;  %v990_v16 = vmax.f32 %v742_v52, 0.0 }
 0x1bf   :  { %v737_v14 = vadd.f32 %v3185_v21, %v736_v50  ;;  %v988_v40 = vmax.f32 %v734_v17, 0.0 }
 0x1c0   :  { %v991_v39 = vmax.f32 %v745_v48, 0.0 }
 0x1c1   :  { %v989_v41 = vmax.f32 %v737_v14, 0.0 }
 0x1c2   :  { %v1053_v43 = vpack.c.bf16 %v991_v39, %v990_v16 }
 0x1c3   :  { %v1052_v44 = vpack.c.bf16 %v989_v41, %v988_v40  ;;  %v2346_v45 = vpop.f32.mrb[36].mxu1 }
 0x1c4   :  { %v758_v46 = vadd.f32 %v2346_v45, %v3185_v21  ;;  %v749_v47 = vpop.f32.mrb[37].mxu1 }
 0x1c5   :  { %v750_v49 = vadd.f32 %v3185_v21, %v749_v47  ;;  %v2347_v51 = vpop.f32.mrb[38].mxu1  ;;  %2420 = vmatprep.mubr.bf16.mxu0 %v1052_v44 }
 0x1c6   :  { %v761_v53 = vadd.f32 %v2347_v51, %v3185_v21  ;;  %v752_v55 = vpop.f32.mrb[39].mxu1  ;;  %2421 = vmatmul.mubr.bf16.vlgmr.msra.gmra.mrb[32].mxu0 %v1053_v43  ;;  %v994_v57 = vmax.f32 %v758_v46, 0.0 }
 0x1c7   :  { %v753_v56 = vadd.f32 %v3185_v21, %v752_v55  ;;  %v992_v59 = vmax.f32 %v750_v49, 0.0 }
 0x1c8   :  { %v995_v58 = vmax.f32 %v761_v53, 0.0 }
 0x1c9   :  { %v993_v60 = vmax.f32 %v753_v56, 0.0 }
 0x1ca   :  { %v1055_v61 = vpack.c.bf16 %v995_v58, %v994_v57 }
 0x1cb   :  { %v1054_v62 = vpack.c.bf16 %v993_v60, %v992_v59  ;;  %v2350_v63 = vpop.f32.mrb[40].mxu1 }
 0x1cc   :  { %v774_v0 = vadd.f32 %v2350_v63, %v3185_v21  ;;  %v765_v1 = vpop.f32.mrb[41].mxu1 }
 0x1cd   :  { %v766_v2 = vadd.f32 %v3185_v21, %v765_v1  ;;  %v2351_v3 = vpop.f32.mrb[42].mxu1  ;;  %2424 = vmatprep.mubr.bf16.mxu0 %v1054_v62 }
 0x1ce   :  { %v777_v4 = vadd.f32 %v2351_v3, %v3185_v21  ;;  %v768_v5 = vpop.f32.mrb[43].mxu1  ;;  %2425 = vmatmul.mubr.bf16.gmra.mrb[36].mxu0 %v1055_v61  ;;  %v998_v7 = vmax.f32 %v774_v0, 0.0 }
 0x1cf   :  { %v769_v6 = vadd.f32 %v3185_v21, %v768_v5  ;;  %v996_v9 = vmax.f32 %v766_v2, 0.0 }
 0x1d0   :  { %v999_v8 = vmax.f32 %v777_v4, 0.0 }
 0x1d1   :  { %v997_v10 = vmax.f32 %v769_v6, 0.0 }
 0x1d2   :  { %v1057_v11 = vpack.c.bf16 %v999_v8, %v998_v7 }
 0x1d3   :  { %v1056_v12 = vpack.c.bf16 %v997_v10, %v996_v9  ;;  %v2354_v13 = vpop.f32.mrb[44].mxu1 }
 0x1d4   :  { %v790_v15 = vadd.f32 %v2354_v13, %v3185_v21  ;;  %v781_v18 = vpop.f32.mrb[45].mxu1 }
 0x1d5   :  { %v782_v20 = vadd.f32 %v3185_v21, %v781_v18  ;;  %v2355_v22 = vpop.f32.mrb[46].mxu1  ;;  %2428 = vmatprep.mubr.bf16.mxu0 %v1056_v12 }
 0x1d6   :  { %v793_v24 = vadd.f32 %v2355_v22, %v3185_v21  ;;  %v784_v25 = vpop.f32.mrb[47].mxu1  ;;  %2429 = vmatmul.mubr.bf16.gmra.mrb[40].mxu0 %v1057_v11  ;;  %v1002_v27 = vmax.f32 %v790_v15, 0.0 }
 0x1d7   :  { %v785_v26 = vadd.f32 %v3185_v21, %v784_v25  ;;  %v1000_v29 = vmax.f32 %v782_v20, 0.0 }
 0x1d8   :  { %v1003_v28 = vmax.f32 %v793_v24, 0.0 }
 0x1d9   :  { %v1001_v30 = vmax.f32 %v785_v26, 0.0 }
 0x1da   :  { %v1059_v31 = vpack.c.bf16 %v1003_v28, %v1002_v27 }
 0x1db   :  { %v1058_v32 = vpack.c.bf16 %v1001_v30, %v1000_v29  ;;  %v2358_v33 = vpop.f32.mrb[48].mxu1 }
 0x1dc   :  { %v806_v34 = vadd.f32 %v2358_v33, %v3185_v21  ;;  %v797_v35 = vpop.f32.mrb[49].mxu1 }
 0x1dd   :  { %v798_v36 = vadd.f32 %v3185_v21, %v797_v35  ;;  %v2359_v37 = vpop.f32.mrb[50].mxu1  ;;  %2432 = vmatprep.mubr.bf16.mxu0 %v1058_v32 }
 0x1de   :  { %v809_v38 = vadd.f32 %v2359_v37, %v3185_v21  ;;  %v800_v42 = vpop.f32.mrb[51].mxu1  ;;  %2433 = vmatmul.mubr.bf16.gmra.mrb[44].mxu0 %v1059_v31  ;;  %v1006_v52 = vmax.f32 %v806_v34, 0.0 }
 0x1df   :  { %v801_v23 = vadd.f32 %v3185_v21, %v800_v42  ;;  %v1004_v17 = vmax.f32 %v798_v36, 0.0 }
 0x1e0   :  { %v1007_v54 = vmax.f32 %v809_v38, 0.0 }
 0x1e1   :  { %v1005_v19 = vmax.f32 %v801_v23, 0.0 }
 0x1e2   :  { %v1061_v48 = vpack.c.bf16 %v1007_v54, %v1006_v52 }
 0x1e3   :  { %v1060_v50 = vpack.c.bf16 %v1005_v19, %v1004_v17  ;;  %v2362_v14 = vpop.f32.mrb[52].mxu1 }
 0x1e4   :  { %v822_v16 = vadd.f32 %v2362_v14, %v3185_v21  ;;  %v813_v39 = vpop.f32.mrb[53].mxu1 }
 0x1e5   :  { %v814_v40 = vadd.f32 %v3185_v21, %v813_v39  ;;  %v2363_v41 = vpop.f32.mrb[54].mxu1  ;;  %2436 = vmatprep.mubr.bf16.mxu0 %v1060_v50 }
 0x1e6   :  { %v825_v43 = vadd.f32 %v2363_v41, %v3185_v21  ;;  %v816_v44 = vpop.f32.mrb[55].mxu1  ;;  %2437 = vmatmul.mubr.bf16.gmra.mrb[48].mxu0 %v1061_v48  ;;  %v1010_v46 = vmax.f32 %v822_v16, 0.0 }
 0x1e7   :  { %v817_v45 = vadd.f32 %v3185_v21, %v816_v44  ;;  %v1008_v49 = vmax.f32 %v814_v40, 0.0 }
 0x1e8   :  { %v1011_v47 = vmax.f32 %v825_v43, 0.0 }
 0x1e9   :  { %v1009_v51 = vmax.f32 %v817_v45, 0.0 }
 0x1ea   :  { %v1063_v53 = vpack.c.bf16 %v1011_v47, %v1010_v46 }
 0x1eb   :  { %v1062_v55 = vpack.c.bf16 %v1009_v51, %v1008_v49  ;;  %v2366_v56 = vpop.f32.mrb[56].mxu1 }
 0x1ec   :  { %v838_v57 = vadd.f32 %v2366_v56, %v3185_v21  ;;  %v829_v58 = vpop.f32.mrb[57].mxu1 }
 0x1ed   :  { %v830_v59 = vadd.f32 %v3185_v21, %v829_v58  ;;  %v2367_v60 = vpop.f32.mrb[58].mxu1  ;;  %2440 = vmatprep.mubr.bf16.mxu0 %v1062_v55 }
 0x1ee   :  { %v841_v61 = vadd.f32 %v2367_v60, %v3185_v21  ;;  %v832_v62 = vpop.f32.mrb[59].mxu1  ;;  %2441 = vmatmul.mubr.bf16.gmra.mrb[52].mxu0 %v1063_v53  ;;  %v1014_v0 = vmax.f32 %v838_v57, 0.0 }
 0x1ef   :  { %v833_v63 = vadd.f32 %v3185_v21, %v832_v62  ;;  %v1012_v2 = vmax.f32 %v830_v59, 0.0 }
 0x1f0   :  { %v1015_v1 = vmax.f32 %v841_v61, 0.0 }
 0x1f1   :  { %v1013_v3 = vmax.f32 %v833_v63, 0.0 }
 0x1f2   :  { %v1065_v4 = vpack.c.bf16 %v1015_v1, %v1014_v0 }
 0x1f3   :  { %v1064_v5 = vpack.c.bf16 %v1013_v3, %v1012_v2  ;;  %v2370_v6 = vpop.f32.mrb[60].mxu1 }
 0x1f4   :  { %v854_v7 = vadd.f32 %v2370_v6, %v3185_v21  ;;  %v845_v8 = vpop.f32.mrb[61].mxu1 }
 0x1f5   :  { %v846_v9 = vadd.f32 %v3185_v21, %v845_v8  ;;  %v2371_v10 = vpop.f32.mrb[62].mxu1  ;;  %2444 = vmatprep.mubr.bf16.mxu0 %v1064_v5 }
 0x1f6   :  { %v857_v11 = vadd.f32 %v2371_v10, %v3185_v21  ;;  %v848_v12 = vpop.f32.mrb[63].mxu1  ;;  %2445 = vmatmul.mubr.bf16.gmra.mrb[56].mxu0 %v1065_v4  ;;  %v1018_v15 = vmax.f32 %v854_v7, 0.0 }
 0x1f7   :  { %v849_v13 = vadd.f32 %v3185_v21, %v848_v12  ;;  %v1016_v20 = vmax.f32 %v846_v9, 0.0 }
 0x1f8   :  { %v1019_v18 = vmax.f32 %v857_v11, 0.0 }
 0x1f9   :  { %v1017_v22 = vmax.f32 %v849_v13, 0.0 }
 0x1fa   :  { %v1067_v24 = vpack.c.bf16 %v1019_v18, %v1018_v15 }
 0x1fb   :  { %v1066_v25 = vpack.c.bf16 %v1017_v22, %v1016_v20  ;;  %v2374_v26 = vpop.f32.mrb[64].mxu1 }
 0x1fc   :  { %v870_v27 = vadd.f32 %v2374_v26, %v3185_v21  ;;  %v861_v28 = vpop.f32.mrb[65].mxu1 }
 0x1fd   :  { %v862_v29 = vadd.f32 %v3185_v21, %v861_v28  ;;  %v2375_v30 = vpop.f32.mrb[66].mxu1  ;;  %2448 = vmatprep.mubr.bf16.mxu0 %v1066_v25 }
 0x1fe   :  { %v873_v31 = vadd.f32 %v2375_v30, %v3185_v21  ;;  %v864_v32 = vpop.f32.mrb[67].mxu1  ;;  %2449 = vmatmul.mubr.bf16.gmra.mrb[60].mxu0 %v1067_v24  ;;  %v1022_v34 = vmax.f32 %v870_v27, 0.0 }
 0x1ff   :  { %v865_v33 = vadd.f32 %v3185_v21, %v864_v32  ;;  %v1020_v36 = vmax.f32 %v862_v29, 0.0 }
 0x200   :  { %v1023_v35 = vmax.f32 %v873_v31, 0.0 }
 0x201   :  { %v1021_v37 = vmax.f32 %v865_v33, 0.0 }
 0x202   :  { %v1069_v38 = vpack.c.bf16 %v1023_v35, %v1022_v34 }
 0x203   :  { %v1068_v42 = vpack.c.bf16 %v1021_v37, %v1020_v36  ;;  %v2378_v23 = vpop.f32.mrb[68].mxu1 }
 0x204   :  { %v886_v52 = vadd.f32 %v2378_v23, %v3185_v21  ;;  %v877_v54 = vpop.f32.mrb[69].mxu1 }
 0x205   :  { %v878_v17 = vadd.f32 %v3185_v21, %v877_v54  ;;  %v2379_v19 = vpop.f32.mrb[70].mxu1  ;;  %2452 = vmatprep.mubr.bf16.mxu0 %v1068_v42 }
 0x206   :  { %v889_v48 = vadd.f32 %v2379_v19, %v3185_v21  ;;  %v880_v50 = vpop.f32.mrb[71].mxu1  ;;  %2453 = vmatmul.mubr.bf16.gmra.mrb[64].mxu0 %v1069_v38  ;;  %v1026_v16 = vmax.f32 %v886_v52, 0.0 }
 0x207   :  { %v881_v14 = vadd.f32 %v3185_v21, %v880_v50  ;;  %v1024_v40 = vmax.f32 %v878_v17, 0.0 }
 0x208   :  { %v1027_v39 = vmax.f32 %v889_v48, 0.0 }
 0x209   :  { %v1025_v41 = vmax.f32 %v881_v14, 0.0 }
 0x20a   :  { %v1071_v43 = vpack.c.bf16 %v1027_v39, %v1026_v16 }
 0x20b   :  { %v1070_v44 = vpack.c.bf16 %v1025_v41, %v1024_v40  ;;  %v2382_v45 = vpop.f32.mrb[72].mxu1 }
 0x20c   :  { %v902_v46 = vadd.f32 %v2382_v45, %v3185_v21  ;;  %v893_v47 = vpop.f32.mrb[73].mxu1 }
 0x20d   :  { %v894_v49 = vadd.f32 %v3185_v21, %v893_v47  ;;  %v2383_v51 = vpop.f32.mrb[74].mxu1  ;;  %2456 = vmatprep.mubr.bf16.mxu0 %v1070_v44 }
 0x20e   :  { %v905_v53 = vadd.f32 %v2383_v51, %v3185_v21  ;;  %v896_v55 = vpop.f32.mrb[75].mxu1  ;;  %2457 = vmatmul.mubr.bf16.gmra.mrb[68].mxu0 %v1071_v43  ;;  %v1030_v57 = vmax.f32 %v902_v46, 0.0 }
 0x20f   :  { %v897_v56 = vadd.f32 %v3185_v21, %v896_v55  ;;  %v1028_v59 = vmax.f32 %v894_v49, 0.0 }
 0x210   :  { %v1031_v58 = vmax.f32 %v905_v53, 0.0 }
 0x211   :  { %v1029_v60 = vmax.f32 %v897_v56, 0.0 }
 0x212   :  { %v1073_v61 = vpack.c.bf16 %v1031_v58, %v1030_v57 }
 0x213   :  { %v1072_v62 = vpack.c.bf16 %v1029_v60, %v1028_v59  ;;  %v2386_v63 = vpop.f32.mrb[76].mxu1 }
 0x214   :  { %v918_v0 = vadd.f32 %v2386_v63, %v3185_v21  ;;  %v909_v1 = vpop.f32.mrb[77].mxu1 }
 0x215   :  { %v910_v2 = vadd.f32 %v3185_v21, %v909_v1  ;;  %v2387_v3 = vpop.f32.mrb[78].mxu1  ;;  %2460 = vmatprep.mubr.bf16.mxu0 %v1072_v62 }
 0x216   :  { %v921_v4 = vadd.f32 %v2387_v3, %v3185_v21  ;;  %v912_v5 = vpop.f32.mrb[79].mxu1  ;;  %2461 = vmatmul.mubr.bf16.gmra.mrb[72].mxu0 %v1073_v61  ;;  %v1034_v7 = vmax.f32 %v918_v0, 0.0 }
 0x217   :  { %v913_v6 = vadd.f32 %v3185_v21, %v912_v5  ;;  %v1032_v9 = vmax.f32 %v910_v2, 0.0 }
 0x218   :  { %v1035_v8 = vmax.f32 %v921_v4, 0.0 }
 0x219   :  { %v1033_v10 = vmax.f32 %v913_v6, 0.0  ;;  %v3254_v6 = vld [vmem:[%s4094_s6] ss:$0 sm:$0xff] }
 0x21a   :  { %v1075_v11 = vpack.c.bf16 %v1035_v8, %v1034_v7 }
 0x21b   :  { %v1074_v12 = vpack.c.bf16 %v1033_v10, %v1032_v9  ;;  %v2390_v13 = vpop.f32.mrb[80].mxu1 }
 0x21c   :  { %v934_v15 = vadd.f32 %v2390_v13, %v3185_v21  ;;  %v925_v18 = vpop.f32.mrb[81].mxu1 }
 0x21d   :  { %v926_v20 = vadd.f32 %v3185_v21, %v925_v18  ;;  %v2391_v22 = vpop.f32.mrb[82].mxu1  ;;  %2464 = vmatprep.mubr.bf16.mxu0 %v1074_v12 }
 0x21e   :  { %v937_v24 = vadd.f32 %v2391_v22, %v3185_v21  ;;  %v928_v25 = vpop.f32.mrb[83].mxu1  ;;  %2465 = vmatmul.mubr.bf16.gmra.mrb[76].mxu0 %v1075_v11  ;;  %v1038_v27 = vmax.f32 %v934_v15, 0.0 }
 0x21f   :  { %v929_v26 = vadd.f32 %v3185_v21, %v928_v25  ;;  %v1036_v29 = vmax.f32 %v926_v20, 0.0 }
 0x220   :  { %v1039_v28 = vmax.f32 %v937_v24, 0.0 }
 0x221   :  { %v1037_v30 = vmax.f32 %v929_v26, 0.0 }
 0x222   :  { %v1077_v31 = vpack.c.bf16 %v1039_v28, %v1038_v27 }
 0x223   :  { %v1076_v32 = vpack.c.bf16 %v1037_v30, %v1036_v29  ;;  %v2394_v33 = vpop.f32.mrb[84].mxu1 }
 0x224   :  { %v950_v34 = vadd.f32 %v2394_v33, %v3185_v21  ;;  %v941_v35 = vpop.f32.mrb[85].mxu1 }
 0x225   :  { %v942_v36 = vadd.f32 %v3185_v21, %v941_v35  ;;  %v2395_v37 = vpop.f32.mrb[86].mxu1  ;;  %2468 = vmatprep.mubr.bf16.mxu0 %v1076_v32 }
 0x226   :  { %v953_v38 = vadd.f32 %v2395_v37, %v3185_v21  ;;  %v944_v42 = vpop.f32.mrb[87].mxu1  ;;  %2469 = vmatmul.mubr.bf16.gmra.mrb[80].mxu0 %v1077_v31  ;;  %v1042_v52 = vmax.f32 %v950_v34, 0.0 }
 0x227   :  { %v945_v23 = vadd.f32 %v3185_v21, %v944_v42  ;;  %v1040_v17 = vmax.f32 %v942_v36, 0.0 }
 0x228   :  { %v1043_v54 = vmax.f32 %v953_v38, 0.0 }
 0x229   :  { %v1041_v19 = vmax.f32 %v945_v23, 0.0 }
 0x22a   :  { %v1079_v48 = vpack.c.bf16 %v1043_v54, %v1042_v52 }
 0x22b   :  { %v1078_v50 = vpack.c.bf16 %v1041_v19, %v1040_v17  ;;  %v2398_v14 = vpop.f32.mrb[88].mxu1 }
 0x22c   :  { %v966_v16 = vadd.f32 %v2398_v14, %v3185_v21  ;;  %v957_v39 = vpop.f32.mrb[89].mxu1 }
 0x22d   :  { %v958_v40 = vadd.f32 %v3185_v21, %v957_v39  ;;  %v2399_v41 = vpop.f32.mrb[90].mxu1  ;;  %2472 = vmatprep.mubr.bf16.mxu0 %v1078_v50 }
 0x22e   :  { %v969_v43 = vadd.f32 %v2399_v41, %v3185_v21  ;;  %v960_v44 = vpop.f32.mrb[91].mxu1  ;;  %2473 = vmatmul.mubr.bf16.gmra.mrb[84].mxu0 %v1079_v48  ;;  %v1046_v46 = vmax.f32 %v966_v16, 0.0 }
 0x22f   :  { %v961_v45 = vadd.f32 %v3185_v21, %v960_v44  ;;  %v1044_v49 = vmax.f32 %v958_v40, 0.0 }
 0x230   :  { %v1047_v47 = vmax.f32 %v969_v43, 0.0 }
 0x231   :  { %v1045_v51 = vmax.f32 %v961_v45, 0.0 }
 0x232   :  { %v1081_v53 = vpack.c.bf16 %v1047_v47, %v1046_v46 }
 0x233   :  { %v1080_v55 = vpack.c.bf16 %v1045_v51, %v1044_v49  ;;  %v2402_v56 = vpop.f32.mrb[92].mxu1 }
 0x234   :  { %v982_v57 = vadd.f32 %v2402_v56, %v3185_v21  ;;  %v973_v58 = vpop.f32.mrb[93].mxu1 }
 0x235   :  { %v974_v59 = vadd.f32 %v3185_v21, %v973_v58  ;;  %v2403_v60 = vpop.f32.mrb[94].mxu1  ;;  %2476 = vmatprep.mubr.bf16.mxu0 %v1080_v55 }
 0x236   :  { %v985_v61 = vadd.f32 %v2403_v60, %v3185_v21  ;;  %v976_v62 = vpop.f32.mrb[95].mxu1  ;;  %2477 = vmatmul.mubr.bf16.gmra.mrb[88].mxu0 %v1081_v53  ;;  %v1050_v0 = vmax.f32 %v982_v57, 0.0 }
 0x237   :  { %v977_v63 = vadd.f32 %v3185_v21, %v976_v62  ;;  %v1048_v2 = vmax.f32 %v974_v59, 0.0 }
 0x238   :  { %v1051_v1 = vmax.f32 %v985_v61, 0.0 }
 0x239   :  { %v1049_v3 = vmax.f32 %v977_v63, 0.0 }
 0x23a   :  { %v1083_v4 = vpack.c.bf16 %v1051_v1, %v1050_v0 }
 0x23b   :  { %v1082_v5 = vpack.c.bf16 %v1049_v3, %v1048_v2 }
 0x23d   :  { %2480 = vmatprep.mubr.bf16.mxu0 %v1082_v5 }
 0x23e   :  { %2481 = vmatmul.mubr.bf16.gmra.mrb[92].mxu0 %v1083_v4 }
 0x299   :  { %v2422_v7 = vpop.f32.mrb[32].mxu0 }
 0x29a   :  { %v3257_v8 = vadd.f32 %v2422_v7, %v3254_v6  ;;  %v1189_v9 = vpop.f32.mrb[33].mxu0 }
 0x29b   :  { %v3260_v21 = vadd.f32 %v3254_v6, %v1189_v9  ;;  %v2423_v10 = vpop.f32.mrb[34].mxu0 }
 0x29c   :  { %1448 = vmax.xlane.f32.xlu1 %v3257_v8  ;;  %v1192_v11 = vpop.f32.mrb[35].mxu0  ;;  %v3265_v12 = vadd.f32 %v2423_v10, %v3254_v6 }
 0x29d   :  { %1444 = vmax.xlane.f32.xlu0 %v3260_v21  ;;  %v3268_v13 = vadd.f32 %v3254_v6, %v1192_v11 }
 0x2a0   :  { %1450 = vmax.xlane.f32.xlu1 %v3265_v12 }
 0x2a1   :  { %v2426_v15 = vpop.f32.mrb[36].mxu0  ;;  %1446 = vmax.xlane.f32.xlu0 %v3268_v13 }
 0x2a2   :  { %v3273_v18 = vadd.f32 %v2426_v15, %v3254_v6  ;;  %v1205_v20 = vpop.f32.mrb[37].mxu0 }
 0x2a3   :  { %v2427_v22 = vpop.f32.mrb[38].mxu0  ;;  %v3281_v26 = vadd.f32 %v3254_v6, %v1205_v20 }
 0x2a4   :  { %v3276_v24 = vadd.f32 %v2427_v22, %v3254_v6  ;;  %v1208_v25 = vpop.f32.mrb[39].mxu0 }
 0x2a5   :  { %1456 = vmax.xlane.f32.xlu0 %v3273_v18  ;;  %v3284_v27 = vadd.f32 %v3254_v6, %v1208_v25 }
 0x2a6   :  { %1458 = vmax.xlane.f32.xlu1 %v3276_v24 }
 0x2a9   :  { %v2430_v28 = vpop.f32.mrb[40].mxu0  ;;  %1452 = vmax.xlane.f32.xlu0 %v3281_v26 }
 0x2aa   :  { %v3288_v29 = vadd.f32 %v2430_v28, %v3254_v6  ;;  %v1221_v30 = vpop.f32.mrb[41].mxu0  ;;  %1454 = vmax.xlane.f32.xlu1 %v3284_v27 }
 0x2ab   :  { %v2431_v31 = vpop.f32.mrb[42].mxu0  ;;  %v3297_v34 = vadd.f32 %v3254_v6, %v1221_v30 }
 0x2ac   :  { %v3292_v32 = vadd.f32 %v2431_v31, %v3254_v6  ;;  %v1224_v33 = vpop.f32.mrb[43].mxu0 }
 0x2ad   :  { %1464 = vmax.xlane.f32.xlu0 %v3288_v29  ;;  %v3300_v35 = vadd.f32 %v3254_v6, %v1224_v33 }
 0x2ae   :  { %1466 = vmax.xlane.f32.xlu1 %v3292_v32 }
 0x2b1   :  { %v2434_v36 = vpop.f32.mrb[44].mxu0  ;;  %1460 = vmax.xlane.f32.xlu0 %v3297_v34 }
 0x2b2   :  { %v3304_v37 = vadd.f32 %v2434_v36, %v3254_v6  ;;  %v1237_v38 = vpop.f32.mrb[45].mxu0  ;;  %1462 = vmax.xlane.f32.xlu1 %v3300_v35 }
 0x2b3   :  { %v2435_v42 = vpop.f32.mrb[46].mxu0  ;;  %v3313_v54 = vadd.f32 %v3254_v6, %v1237_v38 }
 0x2b4   :  { %v3308_v23 = vadd.f32 %v2435_v42, %v3254_v6  ;;  %v1240_v52 = vpop.f32.mrb[47].mxu0 }
 0x2b5   :  { %1472 = vmax.xlane.f32.xlu0 %v3304_v37  ;;  %v3316_v17 = vadd.f32 %v3254_v6, %v1240_v52 }
 0x2b6   :  { %1474 = vmax.xlane.f32.xlu1 %v3308_v23 }
 0x2b9   :  { %v2438_v19 = vpop.f32.mrb[48].mxu0  ;;  %1468 = vmax.xlane.f32.xlu0 %v3313_v54 }
 0x2ba   :  { %v3320_v48 = vadd.f32 %v2438_v19, %v3254_v6  ;;  %v1253_v50 = vpop.f32.mrb[49].mxu0  ;;  %1470 = vmax.xlane.f32.xlu1 %v3316_v17 }
 0x2bb   :  { %v2439_v14 = vpop.f32.mrb[50].mxu0  ;;  %v3329_v40 = vadd.f32 %v3254_v6, %v1253_v50 }
 0x2bc   :  { %v3324_v16 = vadd.f32 %v2439_v14, %v3254_v6  ;;  %v1256_v39 = vpop.f32.mrb[51].mxu0 }
 0x2bd   :  { %1480 = vmax.xlane.f32.xlu0 %v3320_v48  ;;  %v3332_v41 = vadd.f32 %v3254_v6, %v1256_v39 }
 0x2be   :  { %1482 = vmax.xlane.f32.xlu1 %v3324_v16 }
 0x2c1   :  { %v2442_v43 = vpop.f32.mrb[52].mxu0  ;;  %1476 = vmax.xlane.f32.xlu0 %v3329_v40 }
 0x2c2   :  { %v3336_v44 = vadd.f32 %v2442_v43, %v3254_v6  ;;  %v1269_v45 = vpop.f32.mrb[53].mxu0  ;;  %1478 = vmax.xlane.f32.xlu1 %v3332_v41 }
 0x2c3   :  { %v2443_v46 = vpop.f32.mrb[54].mxu0  ;;  %v3345_v51 = vadd.f32 %v3254_v6, %v1269_v45 }
 0x2c4   :  { %v3340_v47 = vadd.f32 %v2443_v46, %v3254_v6  ;;  %v1272_v49 = vpop.f32.mrb[55].mxu0 }
 0x2c5   :  { %1488 = vmax.xlane.f32.xlu0 %v3336_v44  ;;  %v3348_v53 = vadd.f32 %v3254_v6, %v1272_v49 }
 0x2c6   :  { %1490 = vmax.xlane.f32.xlu1 %v3340_v47 }
 0x2c9   :  { %v2446_v55 = vpop.f32.mrb[56].mxu0  ;;  %1484 = vmax.xlane.f32.xlu0 %v3345_v51 }
 0x2ca   :  { %v3352_v56 = vadd.f32 %v2446_v55, %v3254_v6  ;;  %v1285_v57 = vpop.f32.mrb[57].mxu0  ;;  %1486 = vmax.xlane.f32.xlu1 %v3348_v53 }
 0x2cb   :  { %v2447_v58 = vpop.f32.mrb[58].mxu0  ;;  %v3361_v61 = vadd.f32 %v3254_v6, %v1285_v57 }
 0x2cc   :  { %v3356_v59 = vadd.f32 %v2447_v58, %v3254_v6  ;;  %v1288_v60 = vpop.f32.mrb[59].mxu0 }
 0x2cd   :  { %1496 = vmax.xlane.f32.xlu0 %v3352_v56  ;;  %v3364_v62 = vadd.f32 %v3254_v6, %v1288_v60 }
 0x2ce   :  { %1498 = vmax.xlane.f32.xlu1 %v3356_v59 }
 0x2d1   :  { %v2450_v63 = vpop.f32.mrb[60].mxu0  ;;  %1492 = vmax.xlane.f32.xlu0 %v3361_v61 }
 0x2d2   :  { %v3368_v0 = vadd.f32 %v2450_v63, %v3254_v6  ;;  %v1301_v1 = vpop.f32.mrb[61].mxu0  ;;  %1494 = vmax.xlane.f32.xlu1 %v3364_v62 }
 0x2d3   :  { %v2451_v2 = vpop.f32.mrb[62].mxu0  ;;  %v3377_v5 = vadd.f32 %v3254_v6, %v1301_v1 }
 0x2d4   :  { %v3372_v3 = vadd.f32 %v2451_v2, %v3254_v6  ;;  %v1304_v4 = vpop.f32.mrb[63].mxu0 }
 0x2d5   :  { %1504 = vmax.xlane.f32.xlu0 %v3368_v0  ;;  %v3380_v7 = vadd.f32 %v3254_v6, %v1304_v4 }
 0x2d6   :  { %1506 = vmax.xlane.f32.xlu1 %v3372_v3 }
 0x2d9   :  { %v2454_v9 = vpop.f32.mrb[64].mxu0  ;;  %1500 = vmax.xlane.f32.xlu0 %v3377_v5 }
 0x2da   :  { %v3384_v10 = vadd.f32 %v2454_v9, %v3254_v6  ;;  %v1317_v11 = vpop.f32.mrb[65].mxu0  ;;  %1502 = vmax.xlane.f32.xlu1 %v3380_v7 }
 0x2db   :  { %v2455_v15 = vpop.f32.mrb[66].mxu0  ;;  %v3393_v25 = vadd.f32 %v3254_v6, %v1317_v11 }
 0x2dc   :  { %v3388_v20 = vadd.f32 %v2455_v15, %v3254_v6  ;;  %v1320_v22 = vpop.f32.mrb[67].mxu0 }
 0x2dd   :  { %1512 = vmax.xlane.f32.xlu0 %v3384_v10  ;;  %v3396_v28 = vadd.f32 %v3254_v6, %v1320_v22 }
 0x2de   :  { %1514 = vmax.xlane.f32.xlu1 %v3388_v20 }
 0x2e1   :  { %v2458_v30 = vpop.f32.mrb[68].mxu0  ;;  %1508 = vmax.xlane.f32.xlu0 %v3393_v25 }
 0x2e2   :  { %v3400_v31 = vadd.f32 %v2458_v30, %v3254_v6  ;;  %v1333_v33 = vpop.f32.mrb[69].mxu0  ;;  %1510 = vmax.xlane.f32.xlu1 %v3396_v28 }
 0x2e3   :  { %v2459_v36 = vpop.f32.mrb[70].mxu0  ;;  %v3409_v52 = vadd.f32 %v3254_v6, %v1333_v33 }
 0x2e4   :  { %v3404_v38 = vadd.f32 %v2459_v36, %v3254_v6  ;;  %v1336_v42 = vpop.f32.mrb[71].mxu0 }
 0x2e5   :  { %1520 = vmax.xlane.f32.xlu0 %v3400_v31  ;;  %v3412_v19 = vadd.f32 %v3254_v6, %v1336_v42 }
 0x2e6   :  { %1522 = vmax.xlane.f32.xlu1 %v3404_v38 }
 0x2e9   :  { %v2462_v50 = vpop.f32.mrb[72].mxu0  ;;  %1516 = vmax.xlane.f32.xlu0 %v3409_v52 }
 0x2ea   :  { %v3416_v14 = vadd.f32 %v2462_v50, %v3254_v6  ;;  %v1349_v39 = vpop.f32.mrb[73].mxu0  ;;  %1518 = vmax.xlane.f32.xlu1 %v3412_v19 }
 0x2eb   :  { %v2463_v43 = vpop.f32.mrb[74].mxu0  ;;  %v3425_v49 = vadd.f32 %v3254_v6, %v1349_v39 }
 0x2ec   :  { %v3420_v45 = vadd.f32 %v2463_v43, %v3254_v6  ;;  %v1352_v46 = vpop.f32.mrb[75].mxu0 }
 0x2ed   :  { %1528 = vmax.xlane.f32.xlu0 %v3416_v14  ;;  %v3428_v55 = vadd.f32 %v3254_v6, %v1352_v46 }
 0x2ee   :  { %1530 = vmax.xlane.f32.xlu1 %v3420_v45 }
 0x2f1   :  { %v2466_v57 = vpop.f32.mrb[76].mxu0  ;;  %1524 = vmax.xlane.f32.xlu0 %v3425_v49 }
 0x2f2   :  { %v3432_v58 = vadd.f32 %v2466_v57, %v3254_v6  ;;  %v1365_v60 = vpop.f32.mrb[77].mxu0  ;;  %1526 = vmax.xlane.f32.xlu1 %v3428_v55 }
 0x2f3   :  { %v2467_v63 = vpop.f32.mrb[78].mxu0  ;;  %v3441_v4 = vadd.f32 %v3254_v6, %v1365_v60 }
 0x2f4   :  { %v3436_v1 = vadd.f32 %v2467_v63, %v3254_v6  ;;  %v1368_v2 = vpop.f32.mrb[79].mxu0 }
 0x2f5   :  { %1536 = vmax.xlane.f32.xlu0 %v3432_v58  ;;  %v3444_v9 = vadd.f32 %v3254_v6, %v1368_v2 }
 0x2f6   :  { %1538 = vmax.xlane.f32.xlu1 %v3436_v1 }
 0x2f9   :  { %v2470_v11 = vpop.f32.mrb[80].mxu0  ;;  %1532 = vmax.xlane.f32.xlu0 %v3441_v4 }
 0x2fa   :  { %v3448_v15 = vadd.f32 %v2470_v11, %v3254_v6  ;;  %v1381_v22 = vpop.f32.mrb[81].mxu0  ;;  %1534 = vmax.xlane.f32.xlu1 %v3444_v9 }
 0x2fb   :  { %v2471_v30 = vpop.f32.mrb[82].mxu0  ;;  %v3457_v42 = vadd.f32 %v3254_v6, %v1381_v22 }
 0x2fc   :  { %v3452_v33 = vadd.f32 %v2471_v30, %v3254_v6  ;;  %v1384_v36 = vpop.f32.mrb[83].mxu0 }
 0x2fd   :  { %1544 = vmax.xlane.f32.xlu0 %v3448_v15  ;;  %4120 = vst [vmem:[#allocation2_spill] sm:$0xff] %v3457_v42  ;;  %v3460_v50 = vadd.f32 %v3254_v6, %v1384_v36 }
 0x2fe   :  { %1546 = vmax.xlane.f32.xlu1 %v3452_v33 }
 0x2ff   :  { %4121 = vst [vmem:[#allocation3_spill] sm:$0xff] %v3460_v50 }
 0x301   :  { %v2474_v39 = vpop.f32.mrb[84].mxu0  ;;  %1540 = vmax.xlane.f32.xlu0 %v3457_v42 }
 0x302   :  { %v3464_v43 = vadd.f32 %v2474_v39, %v3254_v6  ;;  %v1397_v46 = vpop.f32.mrb[85].mxu0  ;;  %1542 = vmax.xlane.f32.xlu1 %v3460_v50 }
 0x303   :  { %v2475_v57 = vpop.f32.mrb[86].mxu0  ;;  %v3473_v2 = vadd.f32 %v3254_v6, %v1397_v46 }
 0x304   :  { %4122 = vst [vmem:[#allocation4_spill] sm:$0xff] %v3464_v43  ;;  %v3468_v60 = vadd.f32 %v2475_v57, %v3254_v6  ;;  %v1400_v63 = vpop.f32.mrb[87].mxu0 }
 0x305   :  { %1552 = vmax.xlane.f32.xlu0 %v3464_v43  ;;  %4124 = vst [vmem:[#allocation6_spill] sm:$0xff] %v3473_v2  ;;  %v3476_v11 = vadd.f32 %v3254_v6, %v1400_v63 }
 0x306   :  { %4123 = vst [vmem:[#allocation5_spill] sm:$0xff] %v3468_v60  ;;  %1554 = vmax.xlane.f32.xlu1 %v3468_v60 }
 0x307   :  { %4125 = vst [vmem:[#allocation7_spill] sm:$0xff] %v3476_v11 }
 0x309   :  { %v2478_v22 = vpop.f32.mrb[88].mxu0  ;;  %1548 = vmax.xlane.f32.xlu0 %v3473_v2 }
 0x30a   :  { %v3480_v30 = vadd.f32 %v2478_v22, %v3254_v6  ;;  %v1413_v36 = vpop.f32.mrb[89].mxu0  ;;  %1550 = vmax.xlane.f32.xlu1 %v3476_v11 }
 0x30b   :  { %v2479_v39 = vpop.f32.mrb[90].mxu0  ;;  %v3489_v46 = vadd.f32 %v3254_v6, %v1413_v36 }
 0x30c   :  { %4126 = vst [vmem:[#allocation8_spill] sm:$0xff] %v3480_v30  ;;  %v3484_v57 = vadd.f32 %v2479_v39, %v3254_v6  ;;  %v1416_v60 = vpop.f32.mrb[91].mxu0 }
 0x30d   :  { %1560 = vmax.xlane.f32.xlu0 %v3480_v30  ;;  %4128 = vst [vmem:[#allocation10_spill] sm:$0xff] %v3489_v46  ;;  %v3492_v63 = vadd.f32 %v3254_v6, %v1416_v60 }
 0x30e   :  { %4127 = vst [vmem:[#allocation9_spill] sm:$0xff] %v3484_v57  ;;  %1562 = vmax.xlane.f32.xlu1 %v3484_v57 }
 0x30f   :  { %4129 = vst [vmem:[#allocation11_spill] sm:$0xff] %v3492_v63 }
 0x311   :  { %v2482_v22 = vpop.f32.mrb[92].mxu0  ;;  %1556 = vmax.xlane.f32.xlu0 %v3489_v46 }
 0x312   :  { %v3496_v11 = vadd.f32 %v2482_v22, %v3254_v6  ;;  %v1429_v2 = vpop.f32.mrb[93].mxu0  ;;  %1558 = vmax.xlane.f32.xlu1 %v3492_v63 }
 0x313   :  { %v2483_v39 = vpop.f32.mrb[94].mxu0  ;;  %v3505_v60 = vadd.f32 %v3254_v6, %v1429_v2 }
 0x314   :  { %4130 = vst [vmem:[#allocation12_spill] sm:$0xff] %v3496_v11  ;;  %v3500_v30 = vadd.f32 %v2483_v39, %v3254_v6  ;;  %v1432_v57 = vpop.f32.mrb[95].mxu0 }
 0x315   :  { %1568 = vmax.xlane.f32.xlu0 %v3496_v11  ;;  %4132 = vst [vmem:[#allocation14_spill] sm:$0xff] %v3505_v60  ;;  %v3508_v36 = vadd.f32 %v3254_v6, %v1432_v57 }
 0x316   :  { %4131 = vst [vmem:[#allocation13_spill] sm:$0xff] %v3500_v30  ;;  %1570 = vmax.xlane.f32.xlu1 %v3500_v30 }
 0x317   :  { %4133 = vst [vmem:[#allocation15_spill] sm:$0xff] %v3508_v36 }
 0x319   :  { %1564 = vmax.xlane.f32.xlu0 %v3505_v60 }
 0x31a   :  { %1566 = vmax.xlane.f32.xlu1 %v3508_v36 }
 0x329   :  { %v1449_v22 = vpop.xlane.xlu1 %1448 }
 0x32a   :  { %v1574_v63 = vsub.f32 %v3257_v8, %v1449_v22  ;;  %v1445_v39 = vpop.xlane.xlu0 %1444 }
 0x32b   :  { %v1572_v46 = vsub.f32 %v3260_v21, %v1445_v39 }
 0x32c   :  { %v1640_v43 = vmul.f32 1.442695, %v1574_v63 }
 0x32d   :  { %v1636_v11 = vmul.f32 1.442695, %v1572_v46  ;;  %v1451_v50 = vpop.xlane.xlu1 %1450 }
 0x32e   :  { %2506 = vpow2.f32 %v1640_v43  ;;  %v1575_v2 = vsub.f32 %v3265_v12, %v1451_v50  ;;  %v1447_v30 = vpop.xlane.xlu0 %1446 }
 0x32f   :  { %v1573_v6 = vsub.f32 %v3268_v13, %v1447_v30  ;;  %2508 = vpow2.f32 %v1636_v11 }
 0x330   :  { %v1642_v57 = vmul.f32 1.442695, %v1575_v2 }
 0x331   :  { %v1638_v60 = vmul.f32 1.442695, %v1573_v6 }
 0x332   :  { %2510 = vpow2.f32 %v1642_v57  ;;  %v1457_v36 = vpop.xlane.xlu0 %1456 }
 0x333   :  { %v1578_v42 = vsub.f32 %v3273_v18, %v1457_v36  ;;  %v1459_v8 = vpop.xlane.xlu1 %1458  ;;  %2512 = vpow2.f32 %v1638_v60 }
 0x334   :  { %v1579_v22 = vsub.f32 %v3276_v24, %v1459_v8 }
 0x335   :  { %v1648_v21 = vmul.f32 1.442695, %v1578_v42 }
 0x336   :  { %v1650_v46 = vmul.f32 1.442695, %v1579_v22  ;;  %v1453_v63 = vpop.xlane.xlu0 %1452 }
 0x337   :  { %2514 = vpow2.f32 %v1648_v21  ;;  %v1576_v12 = vsub.f32 %v3281_v26, %v1453_v63  ;;  %v1455_v50 = vpop.xlane.xlu1 %1454 }
 0x338   :  { %v3519_v43 = vpop.eup %2506  ;;  %v1577_v13 = vsub.f32 %v3284_v27, %v1455_v50  ;;  %2516 = vpow2.f32 %v1650_v46 }
 0x339   :  { %v1644_v11 = vmul.f32 1.442695, %v1576_v12  ;;  %1768 = vadd.xlane.f32.xlu0 %v3519_v43  ;;  %v3523_v36 = vpop.eup %2508 }
 0x33a   :  { %v1646_v18 = vmul.f32 1.442695, %v1577_v13  ;;  %v1465_v30 = vpop.xlane.xlu0 %1464 }
 0x33b   :  { %2518 = vpow2.f32 %v1644_v11  ;;  %v1582_v24 = vsub.f32 %v3288_v29, %v1465_v30  ;;  %v1467_v42 = vpop.xlane.xlu1 %1466 }
 0x33c   :  { %v3526_v60 = vpop.eup %2510  ;;  %v1583_v26 = vsub.f32 %v3292_v32, %v1467_v42  ;;  %2520 = vpow2.f32 %v1646_v18 }
 0x33d   :  { %v1656_v39 = vmul.f32 1.442695, %v1582_v24  ;;  %1770 = vadd.xlane.f32.xlu1 %v3526_v60  ;;  %1764 = vadd.xlane.f32.xlu0 %v3523_v36  ;;  %v3532_v8 = vpop.eup %2512 }
 0x33e   :  { %v1658_v27 = vmul.f32 1.442695, %v1583_v26  ;;  %v1461_v2 = vpop.xlane.xlu0 %1460 }
 0x33f   :  { %2522 = vpow2.f32 %v1656_v39  ;;  %v1580_v6 = vsub.f32 %v3297_v34, %v1461_v2  ;;  %v1463_v57 = vpop.xlane.xlu1 %1462 }
 0x340   :  { %v1581_v29 = vsub.f32 %v3300_v35, %v1463_v57  ;;  %2524 = vpow2.f32 %v1658_v27 }
 0x341   :  { %v3535_v22 = vpop.eup %2514  ;;  %v1652_v21 = vmul.f32 1.442695, %v1580_v6  ;;  %1766 = vadd.xlane.f32.xlu1 %v3532_v8 }
 0x342   :  { %v1654_v32 = vmul.f32 1.442695, %v1581_v29  ;;  %1776 = vadd.xlane.f32.xlu0 %v3535_v22  ;;  %v1473_v46 = vpop.xlane.xlu0 %1472  ;;  %v3540_v34 = vpop.eup %2516 }
 0x343   :  { %2526 = vpow2.f32 %v1652_v21  ;;  %v1586_v63 = vsub.f32 %v3304_v37, %v1473_v46  ;;  %v1475_v12 = vpop.xlane.xlu1 %1474 }
 0x344   :  { %v1587_v50 = vsub.f32 %v3308_v23, %v1475_v12  ;;  %2528 = vpow2.f32 %v1654_v32 }
 0x345   :  { %v3543_v13 = vpop.eup %2518  ;;  %v1664_v35 = vmul.f32 1.442695, %v1586_v63  ;;  %1778 = vadd.xlane.f32.xlu1 %v3540_v34 }
 0x346   :  { %v1666_v11 = vmul.f32 1.442695, %v1587_v50  ;;  %1772 = vadd.xlane.f32.xlu0 %v3543_v13  ;;  %v1469_v18 = vpop.xlane.xlu0 %1468  ;;  %v3548_v37 = vpop.eup %2520 }
 0x347   :  { %2530 = vpow2.f32 %v1664_v35  ;;  %v1584_v30 = vsub.f32 %v3313_v54, %v1469_v18  ;;  %v1471_v24 = vpop.xlane.xlu1 %1470 }
 0x348   :  { %v1585_v42 = vsub.f32 %v3316_v17, %v1471_v24  ;;  %2532 = vpow2.f32 %v1666_v11 }
 0x349   :  { %v3551_v26 = vpop.eup %2522  ;;  %v1660_v23 = vmul.f32 1.442695, %v1584_v30  ;;  %1774 = vadd.xlane.f32.xlu1 %v3548_v37 }
 0x34a   :  { %v1662_v39 = vmul.f32 1.442695, %v1585_v42  ;;  %1784 = vadd.xlane.f32.xlu0 %v3551_v26  ;;  %v1481_v27 = vpop.xlane.xlu0 %1480  ;;  %v3556_v54 = vpop.eup %2524 }
 0x34b   :  { %2534 = vpow2.f32 %v1660_v23  ;;  %v1590_v2 = vsub.f32 %v3320_v48, %v1481_v27  ;;  %v1483_v6 = vpop.xlane.xlu1 %1482 }
 0x34c   :  { %v1591_v57 = vsub.f32 %v3324_v16, %v1483_v6  ;;  %2536 = vpow2.f32 %v1662_v39 }
 0x34d   :  { %v3559_v29 = vpop.eup %2526  ;;  %v1672_v17 = vmul.f32 1.442695, %v1590_v2  ;;  %1786 = vadd.xlane.f32.xlu1 %v3556_v54 }
 0x34e   :  { %v1674_v21 = vmul.f32 1.442695, %v1591_v57  ;;  %1780 = vadd.xlane.f32.xlu0 %v3559_v29  ;;  %v1477_v32 = vpop.xlane.xlu0 %1476  ;;  %v3564_v48 = vpop.eup %2528 }
 0x34f   :  { %2538 = vpow2.f32 %v1672_v17  ;;  %v1588_v46 = vsub.f32 %v3329_v40, %v1477_v32  ;;  %v1479_v63 = vpop.xlane.xlu1 %1478 }
 0x350   :  { %v1589_v12 = vsub.f32 %v3332_v41, %v1479_v63  ;;  %2540 = vpow2.f32 %v1674_v21 }
 0x351   :  { %v3567_v50 = vpop.eup %2530  ;;  %v1668_v16 = vmul.f32 1.442695, %v1588_v46  ;;  %1782 = vadd.xlane.f32.xlu1 %v3564_v48 }
 0x352   :  { %v1670_v35 = vmul.f32 1.442695, %v1589_v12  ;;  %1792 = vadd.xlane.f32.xlu0 %v3567_v50  ;;  %v1489_v11 = vpop.xlane.xlu0 %1488  ;;  %v3572_v40 = vpop.eup %2532 }
 0x353   :  { %2542 = vpow2.f32 %v1668_v16  ;;  %v1594_v18 = vsub.f32 %v3336_v44, %v1489_v11  ;;  %v1491_v30 = vpop.xlane.xlu1 %1490 }
 0x354   :  { %v1595_v24 = vsub.f32 %v3340_v47, %v1491_v30  ;;  %2544 = vpow2.f32 %v1670_v35 }
 0x355   :  { %v3575_v42 = vpop.eup %2534  ;;  %v1680_v41 = vmul.f32 1.442695, %v1594_v18  ;;  %1794 = vadd.xlane.f32.xlu1 %v3572_v40 }
 0x356   :  { %v1682_v23 = vmul.f32 1.442695, %v1595_v24  ;;  %1788 = vadd.xlane.f32.xlu0 %v3575_v42  ;;  %v1485_v39 = vpop.xlane.xlu0 %1484  ;;  %v3580_v44 = vpop.eup %2536 }
 0x357   :  { %2546 = vpow2.f32 %v1680_v41  ;;  %v1592_v27 = vsub.f32 %v3345_v51, %v1485_v39  ;;  %v1487_v2 = vpop.xlane.xlu1 %1486 }
 0x358   :  { %v1593_v6 = vsub.f32 %v3348_v53, %v1487_v2  ;;  %2548 = vpow2.f32 %v1682_v23 }
 0x359   :  { %v3583_v57 = vpop.eup %2538  ;;  %v1676_v47 = vmul.f32 1.442695, %v1592_v27  ;;  %1790 = vadd.xlane.f32.xlu1 %v3580_v44 }
 0x35a   :  { %v1678_v17 = vmul.f32 1.442695, %v1593_v6  ;;  %1800 = vadd.xlane.f32.xlu0 %v3583_v57  ;;  %v1497_v21 = vpop.xlane.xlu0 %1496  ;;  %v3588_v51 = vpop.eup %2540 }
 0x35b   :  { %2550 = vpow2.f32 %v1676_v47  ;;  %v1598_v32 = vsub.f32 %v3352_v56, %v1497_v21  ;;  %v1499_v46 = vpop.xlane.xlu1 %1498 }
 0x35c   :  { %v1599_v63 = vsub.f32 %v3356_v59, %v1499_v46  ;;  %2552 = vpow2.f32 %v1678_v17 }
 0x35d   :  { %v3591_v12 = vpop.eup %2542  ;;  %v1688_v53 = vmul.f32 1.442695, %v1598_v32  ;;  %1802 = vadd.xlane.f32.xlu1 %v3588_v51 }
 0x35e   :  { %v1690_v16 = vmul.f32 1.442695, %v1599_v63  ;;  %1796 = vadd.xlane.f32.xlu0 %v3591_v12  ;;  %v1493_v35 = vpop.xlane.xlu0 %1492  ;;  %v3596_v56 = vpop.eup %2544 }
 0x35f   :  { %2554 = vpow2.f32 %v1688_v53  ;;  %v1596_v11 = vsub.f32 %v3361_v61, %v1493_v35  ;;  %v1495_v18 = vpop.xlane.xlu1 %1494 }
 0x360   :  { %v1597_v30 = vsub.f32 %v3364_v62, %v1495_v18  ;;  %2556 = vpow2.f32 %v1690_v16 }
 0x361   :  { %v3599_v24 = vpop.eup %2546  ;;  %v1684_v59 = vmul.f32 1.442695, %v1596_v11  ;;  %1798 = vadd.xlane.f32.xlu1 %v3596_v56 }
 0x362   :  { %v1686_v41 = vmul.f32 1.442695, %v1597_v30  ;;  %1808 = vadd.xlane.f32.xlu0 %v3599_v24  ;;  %v1505_v23 = vpop.xlane.xlu0 %1504  ;;  %v3604_v61 = vpop.eup %2548 }
 0x363   :  { %2558 = vpow2.f32 %v1684_v59  ;;  %v1602_v39 = vsub.f32 %v3368_v0, %v1505_v23  ;;  %v1507_v27 = vpop.xlane.xlu1 %1506 }
 0x364   :  { %v1603_v2 = vsub.f32 %v3372_v3, %v1507_v27  ;;  %2560 = vpow2.f32 %v1686_v41 }
 0x365   :  { %v3607_v6 = vpop.eup %2550  ;;  %v1696_v62 = vmul.f32 1.442695, %v1602_v39  ;;  %1810 = vadd.xlane.f32.xlu1 %v3604_v61 }
 0x366   :  { %v1698_v47 = vmul.f32 1.442695, %v1603_v2  ;;  %1804 = vadd.xlane.f32.xlu0 %v3607_v6  ;;  %v1501_v17 = vpop.xlane.xlu0 %1500  ;;  %v3612_v0 = vpop.eup %2552 }
 0x367   :  { %2562 = vpow2.f32 %v1696_v62  ;;  %v1600_v21 = vsub.f32 %v3377_v5, %v1501_v17  ;;  %v1503_v32 = vpop.xlane.xlu1 %1502 }
 0x368   :  { %v1601_v46 = vsub.f32 %v3380_v7, %v1503_v32  ;;  %2564 = vpow2.f32 %v1698_v47 }
 0x369   :  { %v3615_v63 = vpop.eup %2554  ;;  %v1692_v3 = vmul.f32 1.442695, %v1600_v21  ;;  %1806 = vadd.xlane.f32.xlu1 %v3612_v0 }
 0x36a   :  { %v1694_v53 = vmul.f32 1.442695, %v1601_v46  ;;  %1816 = vadd.xlane.f32.xlu0 %v3615_v63  ;;  %v1513_v16 = vpop.xlane.xlu0 %1512  ;;  %v3620_v5 = vpop.eup %2556 }
 0x36b   :  { %2566 = vpow2.f32 %v1692_v3  ;;  %v1606_v35 = vsub.f32 %v3384_v10, %v1513_v16  ;;  %v1515_v11 = vpop.xlane.xlu1 %1514 }
 0x36c   :  { %v1607_v18 = vsub.f32 %v3388_v20, %v1515_v11  ;;  %2568 = vpow2.f32 %v1694_v53 }
 0x36d   :  { %v3623_v30 = vpop.eup %2558  ;;  %v1704_v7 = vmul.f32 1.442695, %v1606_v35  ;;  %1818 = vadd.xlane.f32.xlu1 %v3620_v5 }
 0x36e   :  { %v1706_v59 = vmul.f32 1.442695, %v1607_v18  ;;  %1812 = vadd.xlane.f32.xlu0 %v3623_v30  ;;  %v1509_v41 = vpop.xlane.xlu0 %1508  ;;  %v3628_v10 = vpop.eup %2560 }
 0x36f   :  { %2570 = vpow2.f32 %v1704_v7  ;;  %v1604_v23 = vsub.f32 %v3393_v25, %v1509_v41  ;;  %v1511_v39 = vpop.xlane.xlu1 %1510 }
 0x370   :  { %v1605_v27 = vsub.f32 %v3396_v28, %v1511_v39  ;;  %2572 = vpow2.f32 %v1706_v59 }
 0x371   :  { %v3631_v2 = vpop.eup %2562  ;;  %v1700_v20 = vmul.f32 1.442695, %v1604_v23  ;;  %1814 = vadd.xlane.f32.xlu1 %v3628_v10 }
 0x372   :  { %v1702_v62 = vmul.f32 1.442695, %v1605_v27  ;;  %1824 = vadd.xlane.f32.xlu0 %v3631_v2  ;;  %v1521_v47 = vpop.xlane.xlu0 %1520  ;;  %v3636_v25 = vpop.eup %2564 }
 0x373   :  { %2574 = vpow2.f32 %v1700_v20  ;;  %v1610_v17 = vsub.f32 %v3400_v31, %v1521_v47  ;;  %v1523_v21 = vpop.xlane.xlu1 %1522 }
 0x374   :  { %v1611_v32 = vsub.f32 %v3404_v38, %v1523_v21  ;;  %2576 = vpow2.f32 %v1702_v62 }
 0x375   :  { %v3639_v46 = vpop.eup %2566  ;;  %v1712_v28 = vmul.f32 1.442695, %v1610_v17  ;;  %1826 = vadd.xlane.f32.xlu1 %v3636_v25 }
 0x376   :  { %v1714_v3 = vmul.f32 1.442695, %v1611_v32  ;;  %1820 = vadd.xlane.f32.xlu0 %v3639_v46  ;;  %v1517_v53 = vpop.xlane.xlu0 %1516  ;;  %v3644_v31 = vpop.eup %2568 }
 0x377   :  { %2578 = vpow2.f32 %v1712_v28  ;;  %v1608_v16 = vsub.f32 %v3409_v52, %v1517_v53  ;;  %v1519_v35 = vpop.xlane.xlu1 %1518 }
 0x378   :  { %v1609_v11 = vsub.f32 %v3412_v19, %v1519_v35  ;;  %2580 = vpow2.f32 %v1714_v3 }
 0x379   :  { %v3647_v18 = vpop.eup %2570  ;;  %v1708_v38 = vmul.f32 1.442695, %v1608_v16  ;;  %1822 = vadd.xlane.f32.xlu1 %v3644_v31 }
 0x37a   :  { %v1710_v7 = vmul.f32 1.442695, %v1609_v11  ;;  %1832 = vadd.xlane.f32.xlu0 %v3647_v18  ;;  %v1529_v59 = vpop.xlane.xlu0 %1528  ;;  %v3652_v52 = vpop.eup %2572 }
 0x37b   :  { %2582 = vpow2.f32 %v1708_v38  ;;  %v1614_v41 = vsub.f32 %v3416_v14, %v1529_v59  ;;  %v1531_v23 = vpop.xlane.xlu1 %1530 }
 0x37c   :  { %v1615_v39 = vsub.f32 %v3420_v45, %v1531_v23  ;;  %2584 = vpow2.f32 %v1710_v7 }
 0x37d   :  { %v3655_v27 = vpop.eup %2574  ;;  %v1720_v19 = vmul.f32 1.442695, %v1614_v41  ;;  %1834 = vadd.xlane.f32.xlu1 %v3652_v52 }
 0x37e   :  { %v1722_v20 = vmul.f32 1.442695, %v1615_v39  ;;  %1828 = vadd.xlane.f32.xlu0 %v3655_v27  ;;  %v1525_v62 = vpop.xlane.xlu0 %1524  ;;  %v3660_v14 = vpop.eup %2576 }
 0x37f   :  { %2586 = vpow2.f32 %v1720_v19  ;;  %v1612_v47 = vsub.f32 %v3425_v49, %v1525_v62  ;;  %v1527_v17 = vpop.xlane.xlu1 %1526 }
 0x380   :  { %v1613_v21 = vsub.f32 %v3428_v55, %v1527_v17  ;;  %2588 = vpow2.f32 %v1722_v20 }
 0x381   :  { %v3663_v32 = vpop.eup %2578  ;;  %v1716_v45 = vmul.f32 1.442695, %v1612_v47  ;;  %1830 = vadd.xlane.f32.xlu1 %v3660_v14 }
 0x382   :  { %v1718_v28 = vmul.f32 1.442695, %v1613_v21  ;;  %1840 = vadd.xlane.f32.xlu0 %v3663_v32  ;;  %v1537_v3 = vpop.xlane.xlu0 %1536  ;;  %v3668_v49 = vpop.eup %2580 }
 0x383   :  { %2590 = vpow2.f32 %v1716_v45  ;;  %v1618_v53 = vsub.f32 %v3432_v58, %v1537_v3  ;;  %v1539_v16 = vpop.xlane.xlu1 %1538  ;;  %v4134_v3 = vld [vmem:[#allocation2_spill] sm:$0xff] }
 0x384   :  { %v1619_v35 = vsub.f32 %v3436_v1, %v1539_v16  ;;  %2592 = vpow2.f32 %v1718_v28 }
 0x385   :  { %v3671_v11 = vpop.eup %2582  ;;  %v1728_v55 = vmul.f32 1.442695, %v1618_v53  ;;  %1842 = vadd.xlane.f32.xlu1 %v3668_v49 }
 0x386   :  { %v1730_v38 = vmul.f32 1.442695, %v1619_v35  ;;  %1836 = vadd.xlane.f32.xlu0 %v3671_v11  ;;  %v1533_v7 = vpop.xlane.xlu0 %1532  ;;  %v3676_v58 = vpop.eup %2584  ;;  %v4135_v35 = vld [vmem:[#allocation3_spill] sm:$0xff] }
 0x387   :  { %2594 = vpow2.f32 %v1728_v55  ;;  %v1616_v59 = vsub.f32 %v3441_v4, %v1533_v7  ;;  %v1535_v41 = vpop.xlane.xlu1 %1534 }
 0x388   :  { %v1617_v23 = vsub.f32 %v3444_v9, %v1535_v41  ;;  %2596 = vpow2.f32 %v1730_v38  ;;  %v4136_v41 = vld [vmem:[#allocation4_spill] sm:$0xff] }
 0x389   :  { %v3679_v39 = vpop.eup %2586  ;;  %v1724_v1 = vmul.f32 1.442695, %v1616_v59  ;;  %1838 = vadd.xlane.f32.xlu1 %v3676_v58 }
 0x38a   :  { %v1726_v19 = vmul.f32 1.442695, %v1617_v23  ;;  %1848 = vadd.xlane.f32.xlu0 %v3679_v39  ;;  %v1545_v20 = vpop.xlane.xlu0 %1544  ;;  %v3684_v4 = vpop.eup %2588 }
 0x38b   :  { %2598 = vpow2.f32 %v1724_v1  ;;  %v1622_v62 = vsub.f32 %v3448_v15, %v1545_v20  ;;  %v1547_v47 = vpop.xlane.xlu1 %1546  ;;  %v4137_v20 = vld [vmem:[#allocation5_spill] sm:$0xff] }
 0x38c   :  { %v1623_v17 = vsub.f32 %v3452_v33, %v1547_v47  ;;  %2600 = vpow2.f32 %v1726_v19 }
 0x38d   :  { %v3687_v21 = vpop.eup %2590  ;;  %v1736_v9 = vmul.f32 1.442695, %v1622_v62  ;;  %1850 = vadd.xlane.f32.xlu1 %v3684_v4 }
 0x38e   :  { %v1738_v45 = vmul.f32 1.442695, %v1623_v17  ;;  %1844 = vadd.xlane.f32.xlu0 %v3687_v21  ;;  %v1541_v28 = vpop.xlane.xlu0 %1540  ;;  %v3692_v15 = vpop.eup %2592 }
 0x38f   :  { %2602 = vpow2.f32 %v1736_v9  ;;  %v1620_v53 = vsub.f32 %v4134_v3, %v1541_v28  ;;  %v1543_v16 = vpop.xlane.xlu1 %1542  ;;  %v4139_v28 = vld [vmem:[#allocation6_spill] sm:$0xff] }
 0x390   :  { %v1621_v55 = vsub.f32 %v4135_v35, %v1543_v16  ;;  %2604 = vpow2.f32 %v1738_v45  ;;  %v4141_v35 = vld [vmem:[#allocation7_spill] sm:$0xff] }
 0x391   :  { %v3695_v38 = vpop.eup %2594  ;;  %v1732_v33 = vmul.f32 1.442695, %v1620_v53  ;;  %1846 = vadd.xlane.f32.xlu1 %v3692_v15 }
 0x392   :  { %v1734_v7 = vmul.f32 1.442695, %v1621_v55  ;;  %1856 = vadd.xlane.f32.xlu0 %v3695_v38  ;;  %v1553_v59 = vpop.xlane.xlu0 %1552  ;;  %v3700_v19 = vpop.eup %2596 }
 0x393   :  { %2606 = vpow2.f32 %v1732_v33  ;;  %v1626_v23 = vsub.f32 %v4136_v41, %v1553_v59  ;;  %v1555_v1 = vpop.xlane.xlu1 %1554 }
 0x394   :  { %v1627_v62 = vsub.f32 %v4137_v20, %v1555_v1  ;;  %2608 = vpow2.f32 %v1734_v7 }
 0x395   :  { %v3703_v47 = vpop.eup %2598  ;;  %v1744_v17 = vmul.f32 1.442695, %v1626_v23  ;;  %1858 = vadd.xlane.f32.xlu1 %v3700_v19  ;;  %v4143_v23 = vld [vmem:[#allocation8_spill] sm:$0xff] }
 0x396   :  { %4138 = vst [vmem:[#allocation2_spill] sm:$0xff] %v3703_v47  ;;  %v1746_v9 = vmul.f32 1.442695, %v1627_v62  ;;  %1852 = vadd.xlane.f32.xlu0 %v3703_v47  ;;  %v1549_v45 = vpop.xlane.xlu0 %1548  ;;  %v3708_v16 = vpop.eup %2600 }
 0x397   :  { %2610 = vpow2.f32 %v1744_v17  ;;  %v1624_v3 = vsub.f32 %v4139_v28, %v1549_v45  ;;  %v1551_v53 = vpop.xlane.xlu1 %1550  ;;  %4140 = vst [vmem:[#allocation3_spill] sm:$0xff] %v3708_v16  ;;  %v4145_v17 = vld [vmem:[#allocation9_spill] sm:$0xff] }
 0x398   :  { %v1625_v55 = vsub.f32 %v4141_v35, %v1551_v53  ;;  %2612 = vpow2.f32 %v1746_v9  ;;  %v4147_v35 = vld [vmem:[#allocation10_spill] sm:$0xff] }
 0x399   :  { %v3711_v33 = vpop.eup %2602  ;;  %v1740_v59 = vmul.f32 1.442695, %v1624_v3  ;;  %1854 = vadd.xlane.f32.xlu1 %v3708_v16 }
 0x39a   :  { %4142 = vst [vmem:[#allocation4_spill] sm:$0xff] %v3711_v33  ;;  %v1742_v41 = vmul.f32 1.442695, %v1625_v55  ;;  %1864 = vadd.xlane.f32.xlu0 %v3711_v33  ;;  %v1561_v7 = vpop.xlane.xlu0 %1560  ;;  %v3716_v62 = vpop.eup %2604 }
 0x39b   :  { %2614 = vpow2.f32 %v1740_v59  ;;  %v1630_v1 = vsub.f32 %v4143_v23, %v1561_v7  ;;  %v1563_v20 = vpop.xlane.xlu1 %1562  ;;  %4144 = vst [vmem:[#allocation5_spill] sm:$0xff] %v3716_v62  ;;  %v4149_v23 = vld [vmem:[#allocation11_spill] sm:$0xff] }
 0x39c   :  { %v1631_v45 = vsub.f32 %v4145_v17, %v1563_v20  ;;  %2616 = vpow2.f32 %v1742_v41 }
 0x39d   :  { %v3719_v28 = vpop.eup %2606  ;;  %v1752_v53 = vmul.f32 1.442695, %v1630_v1  ;;  %1866 = vadd.xlane.f32.xlu1 %v3716_v62 }
 0x39e   :  { %4146 = vst [vmem:[#allocation6_spill] sm:$0xff] %v3719_v28  ;;  %v1754_v3 = vmul.f32 1.442695, %v1631_v45  ;;  %1860 = vadd.xlane.f32.xlu0 %v3719_v28  ;;  %v1557_v9 = vpop.xlane.xlu0 %1556  ;;  %v3724_v7 = vpop.eup %2608 }
 0x39f   :  { %2618 = vpow2.f32 %v1752_v53  ;;  %v1628_v55 = vsub.f32 %v4147_v35, %v1557_v9  ;;  %v1559_v59 = vpop.xlane.xlu1 %1558  ;;  %4148 = vst [vmem:[#allocation7_spill] sm:$0xff] %v3724_v7  ;;  %v4152_v35 = vld [vmem:[#allocation12_spill] sm:$0xff] }
 0x3a0   :  { %v1629_v33 = vsub.f32 %v4149_v23, %v1559_v59  ;;  %2620 = vpow2.f32 %v1754_v3  ;;  %v4153_v59 = vld [vmem:[#allocation14_spill] sm:$0xff] }
 0x3a1   :  { %v3727_v16 = vpop.eup %2610  ;;  %v1748_v20 = vmul.f32 1.442695, %v1628_v55  ;;  %1862 = vadd.xlane.f32.xlu1 %v3724_v7  ;;  %v4155_v7 = vld [vmem:[#allocation15_spill] sm:$0xff] }
 0x3a2   :  { %4150 = vst [vmem:[#allocation8_spill] sm:$0xff] %v3727_v16  ;;  %v1750_v1 = vmul.f32 1.442695, %v1629_v33  ;;  %1872 = vadd.xlane.f32.xlu0 %v3727_v16  ;;  %v1569_v41 = vpop.xlane.xlu0 %1568  ;;  %v3731_v45 = vpop.eup %2612  ;;  %v4154_v16 = vld [vmem:[#allocation13_spill] sm:$0xff] }
 0x3a3   :  { %2622 = vpow2.f32 %v1748_v20  ;;  %v1571_v17 = vpop.xlane.xlu1 %1570  ;;  %v1634_v55 = vsub.f32 %v4152_v35, %v1569_v41 }
 0x3a4   :  { %2624 = vpow2.f32 %v1750_v1  ;;  %v1635_v20 = vsub.f32 %v4154_v16, %v1571_v17 }
 0x3a5   :  { %v3733_v53 = vpop.eup %2614  ;;  %1874 = vadd.xlane.f32.xlu1 %v3731_v45 }
 0x3a6   :  { %4151 = vst [vmem:[#allocation9_spill] sm:$0xff] %v3733_v53  ;;  %1868 = vadd.xlane.f32.xlu0 %v3733_v53  ;;  %v1565_v9 = vpop.xlane.xlu0 %1564  ;;  %v3739_v23 = vpop.eup %2616  ;;  %v1760_v53 = vmul.f32 1.442695, %v1634_v55 }
 0x3a7   :  { %v1632_v3 = vsub.f32 %v4153_v59, %v1565_v9  ;;  %v1567_v33 = vpop.xlane.xlu1 %1566  ;;  %v1762_v9 = vmul.f32 1.442695, %v1635_v20 }
 0x3a8   :  { %v1633_v28 = vsub.f32 %v4155_v7, %v1567_v33 }
 0x3a9   :  { %v3743_v62 = vpop.eup %2618  ;;  %v1756_v47 = vmul.f32 1.442695, %v1632_v3  ;;  %1870 = vadd.xlane.f32.xlu1 %v3739_v23 }
 0x3aa   :  { %v1758_v1 = vmul.f32 1.442695, %v1633_v28  ;;  %1880 = vadd.xlane.f32.xlu0 %v3743_v62  ;;  %v3747_v41 = vpop.eup %2620 }
 0x3ab   :  { %2626 = vpow2.f32 %v1756_v47 }
 0x3ac   :  { %2628 = vpow2.f32 %v1758_v1 }
 0x3ad   :  { %v3749_v35 = vpop.eup %2622  ;;  %1882 = vadd.xlane.f32.xlu1 %v3747_v41  ;;  %2630 = vpow2.f32 %v1760_v53 }
 0x3ae   :  { %1876 = vadd.xlane.f32.xlu0 %v3749_v35  ;;  %v3753_v16 = vpop.eup %2624  ;;  %2632 = vpow2.f32 %v1762_v9 }
 0x3b1   :  { %1878 = vadd.xlane.f32.xlu1 %v3753_v16 }
 0x3b5   :  { %v3756_v28 = vpop.eup %2626 }
 0x3b6   :  { %v3758_v7 = vpop.eup %2628  ;;  %1884 = vadd.xlane.f32.xlu0 %v3756_v28 }
 0x3b7   :  { %4156 = vst [vmem:[#allocation10_spill] sm:$0xff] %v3758_v7  ;;  %1886 = vadd.xlane.f32.xlu1 %v3758_v7  ;;  %v3762_v47 = vpop.eup %2630 }
 0x3b8   :  { %v3764_v17 = vpop.eup %2632 }
 0x3b9   :  { %4157 = vst [vmem:[#allocation11_spill] sm:$0xff] %v3764_v17 }
 0x3ba   :  { %1888 = vadd.xlane.f32.xlu0 %v3762_v47 }
 0x3bb   :  { %1890 = vadd.xlane.f32.xlu1 %v3764_v17 }
 0x3c6   :  { %v1769_v53 = vpop.xlane.xlu0 %1768 }
 0x3c7   :  { %2634 = vrcp.f32 %v1769_v53 }
 0x3ca   :  { %v1771_v55 = vpop.xlane.xlu1 %1770  ;;  %v1765_v59 = vpop.xlane.xlu0 %1764 }
 0x3cb   :  { %2636 = vrcp.f32 %v1771_v55 }
 0x3cc   :  { %2638 = vrcp.f32 %v1765_v59 }
 0x3ce   :  { %v1767_v3 = vpop.xlane.xlu1 %1766 }
 0x3cf   :  { %2640 = vrcp.f32 %v1767_v3  ;;  %v1777_v33 = vpop.xlane.xlu0 %1776 }
 0x3d0   :  { %2642 = vrcp.f32 %v1777_v33 }
 0x3d1   :  { %v2635_v20 = vpop.eup %2634 }
 0x3d2   :  { %v1958_v1 = vmul.f32 %v2635_v20, %v3519_v43  ;;  %v1779_v9 = vpop.xlane.xlu1 %1778 }
 0x3d3   :  { %2644 = vrcp.f32 %v1779_v9  ;;  %v1773_v7 = vpop.xlane.xlu0 %1772 }
 0x3d4   :  { %2023 = vst.msk [vmem:[%s4095_s7 + $0x10] sm:$0xff] %vm2020_vm1, %v1958_v1  ;;  %2646 = vrcp.f32 %v1773_v7 }
 0x3d5   :  { %v2637_v53 = vpop.eup %2636 }
 0x3d6   :  { %v2639_v55 = vpop.eup %2638  ;;  %v1959_v59 = vmul.f32 %v2637_v53, %v3526_v60  ;;  %v1775_v3 = vpop.xlane.xlu1 %1774 }
 0x3d7   :  { %v1956_v33 = vmul.f32 %v2639_v55, %v3523_v36  ;;  %2648 = vrcp.f32 %v1775_v3  ;;  %v1785_v17 = vpop.xlane.xlu0 %1784 }
 0x3d8   :  { %2024 = vst.msk [vmem:[%s4095_s7 + $0x18] sm:$0xff] %vm2020_vm1, %v1959_v59  ;;  %2650 = vrcp.f32 %v1785_v17 }
 0x3d9   :  { %v2641_v43 = vpop.eup %2640  ;;  %2021 = vst.msk [vmem:[%s4095_s7] sm:$0xff] %vm2020_vm1, %v1956_v33 }
 0x3da   :  { %v2643_v7 = vpop.eup %2642  ;;  %v1957_v60 = vmul.f32 %v2641_v43, %v3532_v8  ;;  %v1787_v20 = vpop.xlane.xlu1 %1786 }
 0x3db   :  { %v1962_v36 = vmul.f32 %v2643_v7, %v3535_v22  ;;  %2652 = vrcp.f32 %v1787_v20  ;;  %v1781_v1 = vpop.xlane.xlu0 %1780 }
 0x3dc   :  { %2022 = vst.msk [vmem:[%s4095_s7 + $0x8] sm:$0xff] %vm2020_vm1, %v1957_v60  ;;  %2654 = vrcp.f32 %v1781_v1 }
 0x3dd   :  { %v2645_v17 = vpop.eup %2644  ;;  %2027 = vst.msk [vmem:[%s4095_s7 + $0x30] sm:$0xff] %vm2020_vm1, %v1962_v36 }
 0x3de   :  { %v2647_v9 = vpop.eup %2646  ;;  %v1963_v8 = vmul.f32 %v2645_v17, %v3540_v34  ;;  %v1783_v53 = vpop.xlane.xlu1 %1782 }
 0x3df   :  { %v1960_v22 = vmul.f32 %v2647_v9, %v3543_v13  ;;  %2656 = vrcp.f32 %v1783_v53  ;;  %v1793_v55 = vpop.xlane.xlu0 %1792 }
 0x3e0   :  { %2028 = vst.msk [vmem:[%s4095_s7 + $0x38] sm:$0xff] %vm2020_vm1, %v1963_v8  ;;  %2658 = vrcp.f32 %v1793_v55 }
 0x3e1   :  { %v2649_v59 = vpop.eup %2648  ;;  %2025 = vst.msk [vmem:[%s4095_s7 + $0x20] sm:$0xff] %vm2020_vm1, %v1960_v22 }
 0x3e2   :  { %v2651_v3 = vpop.eup %2650  ;;  %v1961_v34 = vmul.f32 %v2649_v59, %v3548_v37  ;;  %v1795_v33 = vpop.xlane.xlu1 %1794 }
 0x3e3   :  { %v1966_v13 = vmul.f32 %v2651_v3, %v3551_v26  ;;  %2660 = vrcp.f32 %v1795_v33  ;;  %v1789_v43 = vpop.xlane.xlu0 %1788 }
 0x3e4   :  { %2026 = vst.msk [vmem:[%s4095_s7 + $0x28] sm:$0xff] %vm2020_vm1, %v1961_v34  ;;  %2662 = vrcp.f32 %v1789_v43 }
 0x3e5   :  { %v2653_v7 = vpop.eup %2652  ;;  %2031 = vst.msk [vmem:[%s4095_s7 + $0x50] sm:$0xff] %vm2020_vm1, %v1966_v13 }
 0x3e6   :  { %v2655_v60 = vpop.eup %2654  ;;  %v1967_v37 = vmul.f32 %v2653_v7, %v3556_v54  ;;  %v1791_v20 = vpop.xlane.xlu1 %1790 }
 0x3e7   :  { %v1964_v26 = vmul.f32 %v2655_v60, %v3559_v29  ;;  %2664 = vrcp.f32 %v1791_v20  ;;  %v1801_v36 = vpop.xlane.xlu0 %1800 }
 0x3e8   :  { %2032 = vst.msk [vmem:[%s4095_s7 + $0x58] sm:$0xff] %vm2020_vm1, %v1967_v37  ;;  %2666 = vrcp.f32 %v1801_v36 }
 0x3e9   :  { %v2657_v1 = vpop.eup %2656  ;;  %2029 = vst.msk [vmem:[%s4095_s7 + $0x40] sm:$0xff] %vm2020_vm1, %v1964_v26 }
 0x3ea   :  { %v2659_v17 = vpop.eup %2658  ;;  %v1965_v54 = vmul.f32 %v2657_v1, %v3564_v48  ;;  %v1803_v9 = vpop.xlane.xlu1 %1802 }
 0x3eb   :  { %v1970_v29 = vmul.f32 %v2659_v17, %v3567_v50  ;;  %2668 = vrcp.f32 %v1803_v9  ;;  %v1797_v8 = vpop.xlane.xlu0 %1796 }
 0x3ec   :  { %2030 = vst.msk [vmem:[%s4095_s7 + $0x48] sm:$0xff] %vm2020_vm1, %v1965_v54  ;;  %2670 = vrcp.f32 %v1797_v8 }
 0x3ed   :  { %v2661_v53 = vpop.eup %2660  ;;  %2035 = vst.msk [vmem:[%s4095_s7 + $0x70] sm:$0xff] %vm2020_vm1, %v1970_v29 }
 0x3ee   :  { %v2663_v22 = vpop.eup %2662  ;;  %v1971_v48 = vmul.f32 %v2661_v53, %v3572_v40  ;;  %v1799_v55 = vpop.xlane.xlu1 %1798 }
 0x3ef   :  { %v1968_v50 = vmul.f32 %v2663_v22, %v3575_v42  ;;  %2672 = vrcp.f32 %v1799_v55  ;;  %v1809_v59 = vpop.xlane.xlu0 %1808 }
 0x3f0   :  { %2036 = vst.msk [vmem:[%s4095_s7 + $0x78] sm:$0xff] %vm2020_vm1, %v1971_v48  ;;  %2674 = vrcp.f32 %v1809_v59 }
 0x3f1   :  { %v2665_v3 = vpop.eup %2664  ;;  %2033 = vst.msk [vmem:[%s4095_s7 + $0x60] sm:$0xff] %vm2020_vm1, %v1968_v50 }
 0x3f2   :  { %v2667_v34 = vpop.eup %2666  ;;  %v1969_v40 = vmul.f32 %v2665_v3, %v3580_v44  ;;  %v1811_v33 = vpop.xlane.xlu1 %1810 }
 0x3f3   :  { %v1974_v42 = vmul.f32 %v2667_v34, %v3583_v57  ;;  %2676 = vrcp.f32 %v1811_v33  ;;  %v1805_v13 = vpop.xlane.xlu0 %1804 }
 0x3f4   :  { %2034 = vst.msk [vmem:[%s4095_s7 + $0x68] sm:$0xff] %vm2020_vm1, %v1969_v40  ;;  %2678 = vrcp.f32 %v1805_v13 }
 0x3f5   :  { %v2669_v43 = vpop.eup %2668  ;;  %2039 = vst.msk [vmem:[%s4095_s7 + $0x90] sm:$0xff] %vm2020_vm1, %v1974_v42 }
 0x3f6   :  { %v2671_v7 = vpop.eup %2670  ;;  %v1975_v44 = vmul.f32 %v2669_v43, %v3588_v51  ;;  %v1807_v60 = vpop.xlane.xlu1 %1806 }
 0x3f7   :  { %v1972_v57 = vmul.f32 %v2671_v7, %v3591_v12  ;;  %2680 = vrcp.f32 %v1807_v60  ;;  %v1817_v37 = vpop.xlane.xlu0 %1816 }
 0x3f8   :  { %2040 = vst.msk [vmem:[%s4095_s7 + $0x98] sm:$0xff] %vm2020_vm1, %v1975_v44  ;;  %2682 = vrcp.f32 %v1817_v37 }
 0x3f9   :  { %v2673_v20 = vpop.eup %2672  ;;  %2037 = vst.msk [vmem:[%s4095_s7 + $0x80] sm:$0xff] %vm2020_vm1, %v1972_v57 }
 0x3fa   :  { %v2675_v26 = vpop.eup %2674  ;;  %v1973_v51 = vmul.f32 %v2673_v20, %v3596_v56  ;;  %v1819_v36 = vpop.xlane.xlu1 %1818 }
 0x3fb   :  { %v1978_v12 = vmul.f32 %v2675_v26, %v3599_v24  ;;  %2684 = vrcp.f32 %v1819_v36  ;;  %v1813_v1 = vpop.xlane.xlu0 %1812 }
 0x3fc   :  { %2038 = vst.msk [vmem:[%s4095_s7 + $0x88] sm:$0xff] %vm2020_vm1, %v1973_v51  ;;  %2686 = vrcp.f32 %v1813_v1 }
 0x3fd   :  { %v2677_v17 = vpop.eup %2676  ;;  %2043 = vst.msk [vmem:[%s4095_s7 + $0xb0] sm:$0xff] %vm2020_vm1, %v1978_v12 }
 0x3fe   :  { %v2679_v54 = vpop.eup %2678  ;;  %v1979_v56 = vmul.f32 %v2677_v17, %v3604_v61  ;;  %v1815_v9 = vpop.xlane.xlu1 %1814 }
 0x3ff   :  { %v1976_v24 = vmul.f32 %v2679_v54, %v3607_v6  ;;  %2688 = vrcp.f32 %v1815_v9  ;;  %v1825_v29 = vpop.xlane.xlu0 %1824 }
 0x400   :  { %2044 = vst.msk [vmem:[%s4095_s7 + $0xb8] sm:$0xff] %vm2020_vm1, %v1979_v56  ;;  %2690 = vrcp.f32 %v1825_v29 }
 0x401   :  { %v2681_v8 = vpop.eup %2680  ;;  %2041 = vst.msk [vmem:[%s4095_s7 + $0xa0] sm:$0xff] %vm2020_vm1, %v1976_v24 }
 0x402   :  { %v2683_v53 = vpop.eup %2682  ;;  %v1977_v61 = vmul.f32 %v2681_v8, %v3612_v0  ;;  %v1827_v22 = vpop.xlane.xlu1 %1826 }
 0x403   :  { %v1982_v6 = vmul.f32 %v2683_v53, %v3615_v63  ;;  %2692 = vrcp.f32 %v1827_v22  ;;  %v1821_v48 = vpop.xlane.xlu0 %1820 }
 0x404   :  { %2042 = vst.msk [vmem:[%s4095_s7 + $0xa8] sm:$0xff] %vm2020_vm1, %v1977_v61  ;;  %2694 = vrcp.f32 %v1821_v48 }
 0x405   :  { %v2685_v55 = vpop.eup %2684  ;;  %2047 = vst.msk [vmem:[%s4095_s7 + $0xd0] sm:$0xff] %vm2020_vm1, %v1982_v6 }
 0x406   :  { %v2687_v50 = vpop.eup %2686  ;;  %v1983_v0 = vmul.f32 %v2685_v55, %v3620_v5  ;;  %v1823_v59 = vpop.xlane.xlu1 %1822 }
 0x407   :  { %v1980_v63 = vmul.f32 %v2687_v50, %v3623_v30  ;;  %2696 = vrcp.f32 %v1823_v59  ;;  %v1833_v3 = vpop.xlane.xlu0 %1832 }
 0x408   :  { %2048 = vst.msk [vmem:[%s4095_s7 + $0xd8] sm:$0xff] %vm2020_vm1, %v1983_v0  ;;  %2698 = vrcp.f32 %v1833_v3 }
 0x409   :  { %v2689_v34 = vpop.eup %2688  ;;  %2045 = vst.msk [vmem:[%s4095_s7 + $0xc0] sm:$0xff] %vm2020_vm1, %v1980_v63 }
 0x40a   :  { %v2691_v40 = vpop.eup %2690  ;;  %v1981_v5 = vmul.f32 %v2689_v34, %v3628_v10  ;;  %v1835_v33 = vpop.xlane.xlu1 %1834 }
 0x40b   :  { %v1986_v30 = vmul.f32 %v2691_v40, %v3631_v2  ;;  %2700 = vrcp.f32 %v1835_v33  ;;  %v1829_v42 = vpop.xlane.xlu0 %1828 }
 0x40c   :  { %2046 = vst.msk [vmem:[%s4095_s7 + $0xc8] sm:$0xff] %vm2020_vm1, %v1981_v5  ;;  %2702 = vrcp.f32 %v1829_v42 }
 0x40d   :  { %v2693_v13 = vpop.eup %2692  ;;  %2051 = vst.msk [vmem:[%s4095_s7 + $0xf0] sm:$0xff] %vm2020_vm1, %v1986_v30  ;;  %v4158_v30 = vld [vmem:[#allocation2_spill] sm:$0xff] }
 0x40e   :  { %v2695_v43 = vpop.eup %2694  ;;  %v1987_v10 = vmul.f32 %v2693_v13, %v3636_v25  ;;  %v1831_v7 = vpop.xlane.xlu1 %1830 }
 0x40f   :  { %v1984_v2 = vmul.f32 %v2695_v43, %v3639_v46  ;;  %2704 = vrcp.f32 %v1831_v7  ;;  %v1841_v44 = vpop.xlane.xlu0 %1840 }
 0x410   :  { %2052 = vst.msk [vmem:[%s4095_s7 + $0xf8] sm:$0xff] %vm2020_vm1, %v1987_v10  ;;  %2706 = vrcp.f32 %v1841_v44  ;;  %v4159_v10 = vld [vmem:[#allocation3_spill] sm:$0xff] }
 0x411   :  { %v2697_v60 = vpop.eup %2696  ;;  %2049 = vst.msk [vmem:[%s4095_s7 + $0xe0] sm:$0xff] %vm2020_vm1, %v1984_v2  ;;  %v4160_v2 = vld [vmem:[#allocation4_spill] sm:$0xff] }
 0x412   :  { %v2699_v57 = vpop.eup %2698  ;;  %v1985_v25 = vmul.f32 %v2697_v60, %v3644_v31  ;;  %v1843_v37 = vpop.xlane.xlu1 %1842 }
 0x413   :  { %v1990_v46 = vmul.f32 %v2699_v57, %v3647_v18  ;;  %2708 = vrcp.f32 %v1843_v37  ;;  %v1837_v20 = vpop.xlane.xlu0 %1836  ;;  %v4161_v37 = vld [vmem:[#allocation5_spill] sm:$0xff] }
 0x414   :  { %2050 = vst.msk [vmem:[%s4095_s7 + $0xe8] sm:$0xff] %vm2020_vm1, %v1985_v25  ;;  %2710 = vrcp.f32 %v1837_v20 }
 0x415   :  { %v2701_v26 = vpop.eup %2700  ;;  %2055 = vst.msk [vmem:[%s4095_s7 + $0x110] sm:$0xff] %vm2020_vm1, %v1990_v46 }
 0x416   :  { %v2703_v51 = vpop.eup %2702  ;;  %v1991_v31 = vmul.f32 %v2701_v26, %v3652_v52  ;;  %v1839_v36 = vpop.xlane.xlu1 %1838  ;;  %v4162_v26 = vld [vmem:[#allocation6_spill] sm:$0xff] }
 0x417   :  { %v1988_v18 = vmul.f32 %v2703_v51, %v3655_v27  ;;  %2712 = vrcp.f32 %v1839_v36  ;;  %v1849_v12 = vpop.xlane.xlu0 %1848 }
 0x418   :  { %2056 = vst.msk [vmem:[%s4095_s7 + $0x118] sm:$0xff] %vm2020_vm1, %v1991_v31  ;;  %2714 = vrcp.f32 %v1849_v12  ;;  %v4163_v12 = vld [vmem:[#allocation7_spill] sm:$0xff] }
 0x419   :  { %v2705_v1 = vpop.eup %2704  ;;  %2053 = vst.msk [vmem:[%s4095_s7 + $0x100] sm:$0xff] %vm2020_vm1, %v1988_v18 }
 0x41a   :  { %v2707_v17 = vpop.eup %2706  ;;  %v1989_v52 = vmul.f32 %v2705_v1, %v3660_v14  ;;  %v1851_v54 = vpop.xlane.xlu1 %1850 }
 0x41b   :  { %v1994_v27 = vmul.f32 %v2707_v17, %v3663_v32  ;;  %2716 = vrcp.f32 %v1851_v54  ;;  %v1845_v56 = vpop.xlane.xlu0 %1844 }
 0x41c   :  { %2054 = vst.msk [vmem:[%s4095_s7 + $0x108] sm:$0xff] %vm2020_vm1, %v1989_v52  ;;  %2718 = vrcp.f32 %v1845_v56  ;;  %v4164_v52 = vld [vmem:[#allocation8_spill] sm:$0xff] }
 0x41d   :  { %v2709_v9 = vpop.eup %2708  ;;  %2059 = vst.msk [vmem:[%s4095_s7 + $0x130] sm:$0xff] %vm2020_vm1, %v1994_v27 }
 0x41e   :  { %v2711_v24 = vpop.eup %2710  ;;  %v1995_v14 = vmul.f32 %v2709_v9, %v3668_v49  ;;  %v1847_v29 = vpop.xlane.xlu1 %1846 }
 0x41f   :  { %v1992_v32 = vmul.f32 %v2711_v24, %v3671_v11  ;;  %2720 = vrcp.f32 %v1847_v29  ;;  %v1857_v8 = vpop.xlane.xlu0 %1856  ;;  %v4165_v29 = vld [vmem:[#allocation9_spill] sm:$0xff] }
 0x420   :  { %2060 = vst.msk [vmem:[%s4095_s7 + $0x138] sm:$0xff] %vm2020_vm1, %v1995_v14  ;;  %2722 = vrcp.f32 %v1857_v8 }
 0x421   :  { %v2713_v53 = vpop.eup %2712  ;;  %2057 = vst.msk [vmem:[%s4095_s7 + $0x120] sm:$0xff] %vm2020_vm1, %v1992_v32 }
 0x422   :  { %v2715_v61 = vpop.eup %2714  ;;  %v1993_v49 = vmul.f32 %v2713_v53, %v3676_v58  ;;  %v1859_v22 = vpop.xlane.xlu1 %1858 }
 0x423   :  { %v1998_v11 = vmul.f32 %v2715_v61, %v3679_v39  ;;  %2724 = vrcp.f32 %v1859_v22  ;;  %v1853_v6 = vpop.xlane.xlu0 %1852 }
 0x424   :  { %2058 = vst.msk [vmem:[%s4095_s7 + $0x128] sm:$0xff] %vm2020_vm1, %v1993_v49  ;;  %2726 = vrcp.f32 %v1853_v6 }
 0x425   :  { %v2717_v48 = vpop.eup %2716  ;;  %2063 = vst.msk [vmem:[%s4095_s7 + $0x150] sm:$0xff] %vm2020_vm1, %v1998_v11 }
 0x426   :  { %v2719_v55 = vpop.eup %2718  ;;  %v1999_v58 = vmul.f32 %v2717_v48, %v3684_v4  ;;  %v1855_v50 = vpop.xlane.xlu1 %1854 }
 0x427   :  { %v1996_v39 = vmul.f32 %v2719_v55, %v3687_v21  ;;  %2728 = vrcp.f32 %v1855_v50  ;;  %v1865_v0 = vpop.xlane.xlu0 %1864 }
 0x428   :  { %2064 = vst.msk [vmem:[%s4095_s7 + $0x158] sm:$0xff] %vm2020_vm1, %v1999_v58  ;;  %2730 = vrcp.f32 %v1865_v0  ;;  %v4166_v0 = vld [vmem:[#allocation10_spill] sm:$0xff] }
 0x429   :  { %v2721_v59 = vpop.eup %2720  ;;  %2061 = vst.msk [vmem:[%s4095_s7 + $0x140] sm:$0xff] %vm2020_vm1, %v1996_v39 }
 0x42a   :  { %v2723_v63 = vpop.eup %2722  ;;  %v1997_v4 = vmul.f32 %v2721_v59, %v3692_v15  ;;  %v1867_v3 = vpop.xlane.xlu1 %1866 }
 0x42b   :  { %v2002_v21 = vmul.f32 %v2723_v63, %v3695_v38  ;;  %2732 = vrcp.f32 %v1867_v3  ;;  %v1861_v34 = vpop.xlane.xlu0 %1860  ;;  %v4167_v3 = vld [vmem:[#allocation11_spill] sm:$0xff] }
 0x42c   :  { %2062 = vst.msk [vmem:[%s4095_s7 + $0x148] sm:$0xff] %vm2020_vm1, %v1997_v4  ;;  %2734 = vrcp.f32 %v1861_v34 }
 0x42d   :  { %v2725_v40 = vpop.eup %2724  ;;  %2067 = vst.msk [vmem:[%s4095_s7 + $0x170] sm:$0xff] %vm2020_vm1, %v2002_v21 }
 0x42e   :  { %v2727_v5 = vpop.eup %2726  ;;  %v2003_v15 = vmul.f32 %v2725_v40, %v3700_v19  ;;  %v1863_v33 = vpop.xlane.xlu1 %1862 }
 0x42f   :  { %v2000_v38 = vmul.f32 %v2727_v5, %v4158_v30  ;;  %2736 = vrcp.f32 %v1863_v33  ;;  %v1873_v42 = vpop.xlane.xlu0 %1872 }
 0x430   :  { %2068 = vst.msk [vmem:[%s4095_s7 + $0x178] sm:$0xff] %vm2020_vm1, %v2003_v15  ;;  %2738 = vrcp.f32 %v1873_v42 }
 0x431   :  { %v2729_v13 = vpop.eup %2728  ;;  %2065 = vst.msk [vmem:[%s4095_s7 + $0x160] sm:$0xff] %vm2020_vm1, %v2000_v38 }
 0x432   :  { %v2731_v43 = vpop.eup %2730  ;;  %v2001_v19 = vmul.f32 %v2729_v13, %v4159_v10  ;;  %v1875_v7 = vpop.xlane.xlu1 %1874 }
 0x433   :  { %v2006_v44 = vmul.f32 %v2731_v43, %v4160_v2  ;;  %2740 = vrcp.f32 %v1875_v7  ;;  %v1869_v60 = vpop.xlane.xlu0 %1868 }
 0x434   :  { %2066 = vst.msk [vmem:[%s4095_s7 + $0x168] sm:$0xff] %vm2020_vm1, %v2001_v19  ;;  %2742 = vrcp.f32 %v1869_v60 }
 0x435   :  { %v2733_v57 = vpop.eup %2732  ;;  %2071 = vst.msk [vmem:[%s4095_s7 + $0x190] sm:$0xff] %vm2020_vm1, %v2006_v44 }
 0x436   :  { %v2735_v25 = vpop.eup %2734  ;;  %v2007_v46 = vmul.f32 %v2733_v57, %v4161_v37  ;;  %v1871_v20 = vpop.xlane.xlu1 %1870 }
 0x437   :  { %v2004_v51 = vmul.f32 %v2735_v25, %v4162_v26  ;;  %2744 = vrcp.f32 %v1871_v20  ;;  %v1881_v31 = vpop.xlane.xlu0 %1880 }
 0x438   :  { %2072 = vst.msk [vmem:[%s4095_s7 + $0x198] sm:$0xff] %vm2020_vm1, %v2007_v46  ;;  %2746 = vrcp.f32 %v1881_v31 }
 0x439   :  { %v2737_v36 = vpop.eup %2736  ;;  %2069 = vst.msk [vmem:[%s4095_s7 + $0x180] sm:$0xff] %vm2020_vm1, %v2004_v51 }
 0x43a   :  { %v2739_v18 = vpop.eup %2738  ;;  %v2005_v1 = vmul.f32 %v2737_v36, %v4163_v12  ;;  %v1883_v17 = vpop.xlane.xlu1 %1882 }
 0x43b   :  { %v2010_v54 = vmul.f32 %v2739_v18, %v4164_v52  ;;  %2748 = vrcp.f32 %v1883_v17  ;;  %v1877_v27 = vpop.xlane.xlu0 %1876 }
 0x43c   :  { %2070 = vst.msk [vmem:[%s4095_s7 + $0x188] sm:$0xff] %vm2020_vm1, %v2005_v1  ;;  %2750 = vrcp.f32 %v1877_v27 }
 0x43d   :  { %v2741_v56 = vpop.eup %2740  ;;  %2075 = vst.msk [vmem:[%s4095_s7 + $0x1b0] sm:$0xff] %vm2020_vm1, %v2010_v54 }
 0x43e   :  { %v2743_v9 = vpop.eup %2742  ;;  %v2011_v24 = vmul.f32 %v2741_v56, %v3731_v45  ;;  %v1879_v14 = vpop.xlane.xlu1 %1878 }
 0x43f   :  { %v2008_v32 = vmul.f32 %v2743_v9, %v4165_v29  ;;  %2752 = vrcp.f32 %v1879_v14 }
 0x440   :  { %2076 = vst.msk [vmem:[%s4095_s7 + $0x1b8] sm:$0xff] %vm2020_vm1, %v2011_v24 }
 0x441   :  { %v2745_v8 = vpop.eup %2744  ;;  %2073 = vst.msk [vmem:[%s4095_s7 + $0x1a0] sm:$0xff] %vm2020_vm1, %v2008_v32 }
 0x442   :  { %v2747_v53 = vpop.eup %2746  ;;  %v2009_v61 = vmul.f32 %v2745_v8, %v3739_v23 }
 0x443   :  { %v2014_v45 = vmul.f32 %v2747_v53, %v3743_v62  ;;  %v1885_v49 = vpop.xlane.xlu0 %1884 }
 0x444   :  { %2074 = vst.msk [vmem:[%s4095_s7 + $0x1a8] sm:$0xff] %vm2020_vm1, %v2009_v61  ;;  %2754 = vrcp.f32 %v1885_v49  ;;  %v1887_v22 = vpop.xlane.xlu1 %1886 }
 0x445   :  { %v2749_v11 = vpop.eup %2748  ;;  %2079 = vst.msk [vmem:[%s4095_s7 + $0x1d0] sm:$0xff] %vm2020_vm1, %v2014_v45  ;;  %2756 = vrcp.f32 %v1887_v22 }
 0x446   :  { %v2751_v6 = vpop.eup %2750  ;;  %v2015_v23 = vmul.f32 %v2749_v11, %v3747_v41 }
 0x447   :  { %v2012_v62 = vmul.f32 %v2751_v6, %v3749_v35  ;;  %v1889_v48 = vpop.xlane.xlu0 %1888 }
 0x448   :  { %2080 = vst.msk [vmem:[%s4095_s7 + $0x1d8] sm:$0xff] %vm2020_vm1, %v2015_v23  ;;  %2758 = vrcp.f32 %v1889_v48  ;;  %v1891_v55 = vpop.xlane.xlu1 %1890 }
 0x449   :  { %v2753_v58 = vpop.eup %2752  ;;  %2077 = vst.msk [vmem:[%s4095_s7 + $0x1c0] sm:$0xff] %vm2020_vm1, %v2012_v62  ;;  %2760 = vrcp.f32 %v1891_v55 }
 0x44a   :  { %v2013_v50 = vmul.f32 %v2753_v58, %v3753_v16 }
 0x44c   :  { %2078 = vst.msk [vmem:[%s4095_s7 + $0x1c8] sm:$0xff] %vm2020_vm1, %v2013_v50 }
 0x44e   :  { %v2755_v41 = vpop.eup %2754 }
 0x44f   :  { %v2757_v35 = vpop.eup %2756  ;;  %v2016_v39 = vmul.f32 %v2755_v41, %v3756_v28 }
 0x450   :  { %v2017_v59 = vmul.f32 %v2757_v35, %v4166_v0 }
 0x451   :  { %2081 = vst.msk [vmem:[%s4095_s7 + $0x1e0] sm:$0xff] %vm2020_vm1, %v2016_v39 }
 0x452   :  { %v2759_v63 = vpop.eup %2758  ;;  %2082 = vst.msk [vmem:[%s4095_s7 + $0x1e8] sm:$0xff] %vm2020_vm1, %v2017_v59 }
 0x453   :  { %v2761_v16 = vpop.eup %2760  ;;  %v2018_v4 = vmul.f32 %v2759_v63, %v3762_v47 }
 0x454   :  { %v2019_v21 = vmul.f32 %v2761_v16, %v4167_v3 }
 0x455   :  { %2083 = vst.msk [vmem:[%s4095_s7 + $0x1f0] sm:$0xff] %vm2020_vm1, %v2018_v4 }
 0x456   :  { %2084 = vst.msk [vmem:[%s4095_s7 + $0x1f8] sm:$0xff] %vm2020_vm1, %v2019_v21 }

</bundles_post_ra>
